<compile_context>
chip_gen: v7x
topology: tpu7x:2x2x1
jax: 0.10.0
libtpu: 0.0.40
codegen_flags: <defaults>
</compile_context>

<pallas_src>
import functools

import jax
import jax.numpy as jnp
from jax import lax
from jax.experimental import pallas as pl
from jax.experimental.pallas import tpu as pltpu


# ---------------------------------------------------------------------------
# Determine pltpu.roll's rotation convention once (tiny probe kernel), so the
# conv taps are correct regardless of sign convention.
# ---------------------------------------------------------------------------
@functools.lru_cache(maxsize=None)
def _roll_prev_shift():
    """Return shift s such that pltpu.roll(h, s, axis=0)[i] == h[i-1] (mod n)."""
    def probe(o_ref):
        rows = lax.broadcasted_iota(jnp.int32, (8, 128), 0)
        o_ref[...] = pltpu.roll(rows, shift=1, axis=0)

    try:
        res = pl.pallas_call(
            probe, out_shape=jax.ShapeDtypeStruct((8, 128), jnp.int32))()
        return 1 if int(res[1, 0]) == 0 else -1
    except Exception:
        return 1  # assume jnp.roll semantics


# ---------------------------------------------------------------------------
# Pallas kernel: the whole conv stack for one batch tile per grid step.
# ---------------------------------------------------------------------------
def _cnn_kernel(x_ref, w0_ref, w_ref, b_ref, ma_ref, mb_ref, mc_ref, out_ref,
                *, prev_shift):
    f32 = jnp.float32

    def conv3_relu(h, w0, w1, w2, b, nf, nl):
        # h: (M, Cin); w*: (Cin, Cout); b: (1, Cout); nf/nl: (M, 1) boundary masks.
        n = h.shape[0]
        h_prev = pltpu.roll(h, shift=prev_shift % n, axis=0) * nf       # h[i-1]
        h_next = pltpu.roll(h, shift=(-prev_shift) % n, axis=0) * nl    # h[i+1]
        y = (jnp.dot(h_prev, w0, preferred_element_type=f32)
             + jnp.dot(h, w1, preferred_element_type=f32)
             + jnp.dot(h_next, w2, preferred_element_type=f32))
        return jnp.maximum(y + b, 0.0)

    def maxpool2(h):
        # (M, C) -> (M//2, C): max over adjacent row pairs (pairs never cross an
        # example boundary because every per-example length here is even).
        n, c = h.shape
        return jnp.max(h.reshape(n // 2, 2, c), axis=1)

    # Boundary masks, hoisted (loaded once, reused across the layers of each block).
    nf_a = ma_ref[...][:, 0:1]
    nl_a = ma_ref[...][:, 1:2]
    nf_b = mb_ref[...][:, 0:1]
    nl_b = mb_ref[...][:, 1:2]
    nf_c = mc_ref[...][:, 0:1]
    nl_c = mc_ref[...][:, 1:2]

    h = x_ref[...].astype(f32)                                      # (btile*L, C)

    # Block 1: conv layers 0..2 (C -> 64 -> 64 -> 64), then pool.
    h = conv3_relu(h, w0_ref[0], w0_ref[1], w0_ref[2], b_ref[0], nf_a, nl_a)
    for layer in (1, 2):
        h = conv3_relu(h, w_ref[layer - 1, 0], w_ref[layer - 1, 1],
                       w_ref[layer - 1, 2], b_ref[layer], nf_a, nl_a)
    h = maxpool2(h)

    # Block 2: conv layers 3..5 (64 -> 32 -> 32 -> 32, zero-padded to 64 lanes), pool.
    for layer in (3, 4, 5):
        h = conv3_relu(h, w_ref[layer - 1, 0], w_ref[layer - 1, 1],
                       w_ref[layer - 1, 2], b_ref[layer], nf_b, nl_b)
    h = maxpool2(h)

    # Block 3: conv layers 6..7 (32 -> 16 -> 16, zero-padded to 64 lanes), pool.
    for layer in (6, 7):
        h = conv3_relu(h, w_ref[layer - 1, 0], w_ref[layer - 1, 1],
                       w_ref[layer - 1, 2], b_ref[layer], nf_c, nl_c)
    h = maxpool2(h)                                                 # (btile*Lf, 64)

    # Channel-major flatten done in-kernel: select the 16 real channels and transpose
    # with a tiny MXU matmul -> lane-dense store of shape (16, btile*Lf).
    sel = (lax.broadcasted_iota(jnp.int32, (16, 64), 0)
           == lax.broadcasted_iota(jnp.int32, (16, 64), 1)).astype(f32)
    out_t = lax.dot_general(sel, h, (((1,), (1,)), ((), ())),
                            preferred_element_type=f32)             # (16, btile*Lf)
    out_ref[0] = out_t.astype(out_ref.dtype)


# ---------------------------------------------------------------------------
# Wrapper: batch tiling, parameter packing, pallas_call, final reshape.
# ---------------------------------------------------------------------------
def custom_cnn1d_reverse(x, params, *, btile=None):
    """x: (B, L, C) float32; params: list of 8 (w (Cout, Cin, 3), b (Cout,)) tuples."""
    B, L, C = x.shape
    if L % 8 != 0:
        raise ValueError("sequence length must be divisible by 8 (three MaxPool1d(2))")
    Lf = L // 8
    C_final = 16
    assert len(params) == 8
    assert params[0][0].shape == (64, C, 3)

    # ---- batch tiling: stack btile examples into the matmul M dimension ----
    if btile is None:
        target_rows = 2048          # M rows/step: fills MXU, amortizes ~0.35us/step,
        btile = max(1, min(B, max(1, target_rows // L)))   # and stays well under VMEM.
    btile = int(min(btile, B))
    n_tiles = -(-B // btile)
    Bp = n_tiles * btile
    if Bp != B:
        x = jnp.concatenate([x, jnp.zeros((Bp - B, L, C), x.dtype)], axis=0)
    x2 = x.reshape(Bp * L, C)

    # ---- pack parameters: one zero-padded weight stack + one bias stack ----
    # NOTE: bf16 MXU operands (keeping f32 accumulation) would speed up v6e/v7x further
    # but loosens agreement with the f32 reference, so f32 operands are kept here.
    w0, b0 = params[0]
    w0_k = jnp.transpose(w0.astype(jnp.float32), (2, 1, 0))          # (3, C, 64)
    w_stack = jnp.zeros((7, 3, 64, 64), jnp.float32)
    b_stack = jnp.zeros((8, 1, 64), jnp.float32)
    b_stack = b_stack.at[0, 0, :].set(b0.astype(jnp.float32))
    for li in range(1, 8):
        w, b = params[li]
        cout, cin, _ = w.shape
        wk = jnp.transpose(w.astype(jnp.float32), (2, 1, 0))         # (3, cin, cout)
        w_stack = w_stack.at[li - 1, :, :cin, :cout].set(wk)
        b_stack = b_stack.at[li, 0, :cout].set(b.astype(jnp.float32))

    # ---- per-row conv boundary masks (not-first / not-last within an example) ----
    def boundary_masks(lcur):
        pos = jnp.arange(btile * lcur, dtype=jnp.int32) % lcur
        nf = (pos != 0).astype(jnp.float32)
        nl = (pos != lcur - 1).astype(jnp.float32)
        return jnp.stack([nf, nl], axis=1)                           # (btile*lcur, 2)

    m_a = boundary_masks(L)
    m_b = boundary_masks(L // 2)
    m_c = boundary_masks(L // 4)

    kernel = functools.partial(_cnn_kernel, prev_shift=_roll_prev_shift())

    out = pl.pallas_call(
        kernel,
        out_shape=jax.ShapeDtypeStruct((n_tiles, C_final, btile * Lf), jnp.float32),
        grid_spec=pltpu.PrefetchScalarGridSpec(
            num_scalar_prefetch=0,
            grid=(n_tiles,),
            in_specs=[
                pl.BlockSpec((btile * L, C), lambda i: (i, 0)),            # x (stacked)
                pl.BlockSpec((3, C, 64), lambda i: (0, 0, 0)),             # first-layer w
                pl.BlockSpec((7, 3, 64, 64), lambda i: (0, 0, 0, 0)),      # padded w stack
                pl.BlockSpec((8, 1, 64), lambda i: (0, 0, 0)),             # bias stack
                pl.BlockSpec((btile * L, 2), lambda i: (0, 0)),            # masks, L
                pl.BlockSpec((btile * (L // 2), 2), lambda i: (0, 0)),     # masks, L/2
                pl.BlockSpec((btile * (L // 4), 2), lambda i: (0, 0)),     # masks, L/4
            ],
            out_specs=pl.BlockSpec((1, C_final, btile * Lf), lambda i: (i, 0, 0)),
        ),
        compiler_params=pltpu.CompilerParams(
            dimension_semantics=("parallel",),
            vmem_limit_bytes=32 * 1024 * 1024,
        ),
    )(x2, w0_k, w_stack, b_stack, m_a, m_b, m_c)

    # (n_tiles, 16, btile*Lf) -> (B, 16*Lf); matches torch Flatten on (B, 16, L//8).
    out = out.reshape(n_tiles, C_final, btile, Lf)
    out = jnp.transpose(out, (0, 2, 1, 3)).reshape(Bp, C_final * Lf)
    return out[:B]


# ---------------------------------------------------------------------------
# Pure-JAX reference (mirrors the PyTorch module exactly) for verification.
# ---------------------------------------------------------------------------
def reference_forward(x, params):
    h = jnp.transpose(x, (0, 2, 1))           # (B, C, L)
    for i, (w, b) in enumerate(params):
        h = lax.conv_general_dilated(
            h, w, window_strides=(1,), padding=((1, 1),),
            dimension_numbers=("NCH", "OIH", "NCH"))
        h = jnp.maximum(h + b[None, :, None], 0.0)
        if i in (2, 5, 7):
            B_, C_, L_ = h.shape
            h = jnp.max(h.reshape(B_, C_, L_ // 2, 2), axis=-1)
    return h.reshape(h.shape[0], -1)


# ---------------------------------------------------------------------------
# Deterministic parameter construction.
# ---------------------------------------------------------------------------
def make_params(key, in_channels):
    layer_dims = [(in_channels, 64), (64, 64), (64, 64),
                  (64, 32), (32, 32), (32, 32),
                  (32, 16), (16, 16)]
    params = []
    for (cin, cout) in layer_dims:
        key, kw, kb = jax.random.split(key, 3)
        w = 0.1 * jax.random.normal(kw, (cout, cin, 3), dtype=jnp.float32)
        b = 0.1 * jax.random.normal(kb, (cout,), dtype=jnp.float32)
        params.append((w, b))
    return params


if __name__ == "__main__":
    key = jax.random.PRNGKey(0)

    # Config 1: small shapes; both examples share one batch tile, so the in-tile
    # conv boundary masks are exercised.
    B, L, C = 2, 16, 4
    key, kx = jax.random.split(key)
    x = jax.random.normal(kx, (B, L, C), dtype=jnp.float32)
    params = make_params(key, C)

    out = jax.block_until_ready(custom_cnn1d_reverse(x, params))
    ref = reference_forward(x, params)
    assert out.shape == (B, 16 * (L // 8)), out.shape
    assert jnp.allclose(out, ref, atol=1e-4, rtol=1e-4), \
        f"max err {jnp.max(jnp.abs(out - ref))}"

    # Config 2: batch not divisible by the tile -> exercises batch padding and a
    # multi-step "parallel" grid.
    B2 = 5
    key, kx2 = jax.random.split(key)
    x_b = jax.random.normal(kx2, (B2, L, C), dtype=jnp.float32)
    out2 = jax.block_until_ready(custom_cnn1d_reverse(x_b, params, btile=2))
    ref2 = reference_forward(x_b, params)
    assert out2.shape == (B2, 16 * (L // 8)), out2.shape
    assert jnp.allclose(out2, ref2, atol=1e-4, rtol=1e-4), \
        f"max err {jnp.max(jnp.abs(out2 - ref2))}"

    print("KERNEL_OK")
</pallas_src>

<mosaic_0001>
module attributes {stable_mosaic.version = 11 : i64} {
  func.func @_cnn_kernel(%arg0: i32, %arg1: memref<32x4xf32, #tpu.memory_space<vmem>>, %arg2: memref<3x4x64xf32, #tpu.memory_space<vmem>>, %arg3: memref<7x3x64x64xf32, #tpu.memory_space<vmem>>, %arg4: memref<8x1x64xf32, #tpu.memory_space<vmem>>, %arg5: memref<32x2xf32, #tpu.memory_space<vmem>>, %arg6: memref<16x2xf32, #tpu.memory_space<vmem>>, %arg7: memref<8x2xf32, #tpu.memory_space<vmem>>, %arg8: memref<1x16x4xf32, #tpu.memory_space<vmem>>) attributes {dimension_semantics = [#tpu.dimension_semantics<parallel>], iteration_bounds = array<i64: 1>, scalar_prefetch = 0 : i64, scratch_operands = 0 : i64, tpu.core_type = #tpu.core_type<tc>, window_params = [{transform_indices = @transform_0, window_bounds = array<i64: 32, 4>}, {pipeline_mode = #tpu.pipeline_mode<synchronous>, transform_indices = @transform_1, window_bounds = array<i64: 3, 4, 64>}, {pipeline_mode = #tpu.pipeline_mode<synchronous>, transform_indices = @transform_2, window_bounds = array<i64: 7, 3, 64, 64>}, {pipeline_mode = #tpu.pipeline_mode<synchronous>, transform_indices = @transform_3, window_bounds = array<i64: 8, 1, 64>}, {pipeline_mode = #tpu.pipeline_mode<synchronous>, transform_indices = @transform_4, window_bounds = array<i64: 32, 2>}, {pipeline_mode = #tpu.pipeline_mode<synchronous>, transform_indices = @transform_5, window_bounds = array<i64: 16, 2>}, {pipeline_mode = #tpu.pipeline_mode<synchronous>, transform_indices = @transform_6, window_bounds = array<i64: 8, 2>}, {transform_indices = @transform_7, window_bounds = array<i64: 1, 16, 4>}]} {
    %c0 = arith.constant 0 : index
    %c0_0 = arith.constant 0 : index
    %0 = vector.load %arg5[%c0, %c0_0] : memref<32x2xf32, #tpu.memory_space<vmem>>, vector<32x2xf32>
    %1 = vector.extract_strided_slice %0 {offsets = [0, 0], sizes = [32, 1], strides = [1, 1]} : vector<32x2xf32> to vector<32x1xf32>
    %c0_1 = arith.constant 0 : index
    %c0_2 = arith.constant 0 : index
    %2 = vector.load %arg5[%c0_1, %c0_2] : memref<32x2xf32, #tpu.memory_space<vmem>>, vector<32x2xf32>
    %3 = vector.extract_strided_slice %2 {offsets = [0, 1], sizes = [32, 1], strides = [1, 1]} : vector<32x2xf32> to vector<32x1xf32>
    %c0_3 = arith.constant 0 : index
    %c0_4 = arith.constant 0 : index
    %4 = vector.load %arg6[%c0_3, %c0_4] : memref<16x2xf32, #tpu.memory_space<vmem>>, vector<16x2xf32>
    %5 = vector.extract_strided_slice %4 {offsets = [0, 0], sizes = [16, 1], strides = [1, 1]} : vector<16x2xf32> to vector<16x1xf32>
    %c0_5 = arith.constant 0 : index
    %c0_6 = arith.constant 0 : index
    %6 = vector.load %arg6[%c0_5, %c0_6] : memref<16x2xf32, #tpu.memory_space<vmem>>, vector<16x2xf32>
    %7 = vector.extract_strided_slice %6 {offsets = [0, 1], sizes = [16, 1], strides = [1, 1]} : vector<16x2xf32> to vector<16x1xf32>
    %c0_7 = arith.constant 0 : index
    %c0_8 = arith.constant 0 : index
    %8 = vector.load %arg7[%c0_7, %c0_8] : memref<8x2xf32, #tpu.memory_space<vmem>>, vector<8x2xf32>
    %9 = vector.extract_strided_slice %8 {offsets = [0, 0], sizes = [8, 1], strides = [1, 1]} : vector<8x2xf32> to vector<8x1xf32>
    %c0_9 = arith.constant 0 : index
    %c0_10 = arith.constant 0 : index
    %10 = vector.load %arg7[%c0_9, %c0_10] : memref<8x2xf32, #tpu.memory_space<vmem>>, vector<8x2xf32>
    %11 = vector.extract_strided_slice %10 {offsets = [0, 1], sizes = [8, 1], strides = [1, 1]} : vector<8x2xf32> to vector<8x1xf32>
    %c0_11 = arith.constant 0 : index
    %c0_12 = arith.constant 0 : index
    %12 = vector.load %arg1[%c0_11, %c0_12] : memref<32x4xf32, #tpu.memory_space<vmem>>, vector<32x4xf32>
    %c0_13 = arith.constant 0 : index
    %c0_14 = arith.constant 0 : index
    %c0_15 = arith.constant 0 : index
    %13 = vector.load %arg2[%c0_13, %c0_14, %c0_15] : memref<3x4x64xf32, #tpu.memory_space<vmem>>, vector<1x4x64xf32>
    %14 = vector.shape_cast %13 : vector<1x4x64xf32> to vector<4x64xf32>
    %c1 = arith.constant 1 : index
    %c0_16 = arith.constant 0 : index
    %c0_17 = arith.constant 0 : index
    %15 = vector.load %arg2[%c1, %c0_16, %c0_17] : memref<3x4x64xf32, #tpu.memory_space<vmem>>, vector<1x4x64xf32>
    %16 = vector.shape_cast %15 : vector<1x4x64xf32> to vector<4x64xf32>
    %c2 = arith.constant 2 : index
    %c0_18 = arith.constant 0 : index
    %c0_19 = arith.constant 0 : index
    %17 = vector.load %arg2[%c2, %c0_18, %c0_19] : memref<3x4x64xf32, #tpu.memory_space<vmem>>, vector<1x4x64xf32>
    %18 = vector.shape_cast %17 : vector<1x4x64xf32> to vector<4x64xf32>
    %c0_20 = arith.constant 0 : index
    %c0_21 = arith.constant 0 : index
    %c0_22 = arith.constant 0 : index
    %19 = vector.load %arg4[%c0_20, %c0_21, %c0_22] : memref<8x1x64xf32, #tpu.memory_space<vmem>>, vector<1x1x64xf32>
    %20 = vector.shape_cast %19 : vector<1x1x64xf32> to vector<1x64xf32>
    %c1_i32 = arith.constant 1 : i32
    %21 = tpu.dynamic_rotate %12 by %c1_i32 dim 0 : vector<32x4xf32>, i32 -> vector<32x4xf32>
    %22 = vector.broadcast %1 : vector<32x1xf32> to vector<32x4xf32>
    %23 = arith.mulf %21, %22 : vector<32x4xf32>
    %c31_i32 = arith.constant 31 : i32
    %24 = tpu.dynamic_rotate %12 by %c31_i32 dim 0 : vector<32x4xf32>, i32 -> vector<32x4xf32>
    %25 = vector.broadcast %3 : vector<32x1xf32> to vector<32x4xf32>
    %26 = arith.mulf %24, %25 : vector<32x4xf32>
    %cst = arith.constant dense<0.000000e+00> : vector<32x64xf32>
    %27 = tpu.matmul %23, %14, %cst {dimension_numbers = #tpu.dot_dimension_numbers<[1], [0], [0], [1], [0, 0, 1, 1], [], []>} : vector<32x4xf32>, vector<4x64xf32>, vector<32x64xf32> -> vector<32x64xf32>
    %cst_23 = arith.constant dense<0.000000e+00> : vector<32x64xf32>
    %28 = tpu.matmul %12, %16, %cst_23 {dimension_numbers = #tpu.dot_dimension_numbers<[1], [0], [0], [1], [0, 0, 1, 1], [], []>} : vector<32x4xf32>, vector<4x64xf32>, vector<32x64xf32> -> vector<32x64xf32>
    %29 = arith.addf %27, %28 : vector<32x64xf32>
    %cst_24 = arith.constant dense<0.000000e+00> : vector<32x64xf32>
    %30 = tpu.matmul %26, %18, %cst_24 {dimension_numbers = #tpu.dot_dimension_numbers<[1], [0], [0], [1], [0, 0, 1, 1], [], []>} : vector<32x4xf32>, vector<4x64xf32>, vector<32x64xf32> -> vector<32x64xf32>
    %31 = arith.addf %29, %30 : vector<32x64xf32>
    %32 = vector.broadcast %20 : vector<1x64xf32> to vector<32x64xf32>
    %33 = arith.addf %31, %32 : vector<32x64xf32>
    %cst_25 = arith.constant 0.000000e+00 : f32
    %34 = vector.broadcast %cst_25 : f32 to vector<32x64xf32>
    %35 = arith.maximumf %33, %34 : vector<32x64xf32>
    %c0_26 = arith.constant 0 : index
    %c0_27 = arith.constant 0 : index
    %c0_28 = arith.constant 0 : index
    %c0_29 = arith.constant 0 : index
    %36 = vector.load %arg3[%c0_26, %c0_27, %c0_28, %c0_29] : memref<7x3x64x64xf32, #tpu.memory_space<vmem>>, vector<1x1x64x64xf32>
    %37 = vector.shape_cast %36 : vector<1x1x64x64xf32> to vector<64x64xf32>
    %c0_30 = arith.constant 0 : index
    %c1_31 = arith.constant 1 : index
    %c0_32 = arith.constant 0 : index
    %c0_33 = arith.constant 0 : index
    %38 = vector.load %arg3[%c0_30, %c1_31, %c0_32, %c0_33] : memref<7x3x64x64xf32, #tpu.memory_space<vmem>>, vector<1x1x64x64xf32>
    %39 = vector.shape_cast %38 : vector<1x1x64x64xf32> to vector<64x64xf32>
    %c0_34 = arith.constant 0 : index
    %c2_35 = arith.constant 2 : index
    %c0_36 = arith.constant 0 : index
    %c0_37 = arith.constant 0 : index
    %40 = vector.load %arg3[%c0_34, %c2_35, %c0_36, %c0_37] : memref<7x3x64x64xf32, #tpu.memory_space<vmem>>, vector<1x1x64x64xf32>
    %41 = vector.shape_cast %40 : vector<1x1x64x64xf32> to vector<64x64xf32>
    %c1_38 = arith.constant 1 : index
    %c0_39 = arith.constant 0 : index
    %c0_40 = arith.constant 0 : index
    %42 = vector.load %arg4[%c1_38, %c0_39, %c0_40] : memref<8x1x64xf32, #tpu.memory_space<vmem>>, vector<1x1x64xf32>
    %43 = vector.shape_cast %42 : vector<1x1x64xf32> to vector<1x64xf32>
    %c1_i32_41 = arith.constant 1 : i32
    %44 = tpu.dynamic_rotate %35 by %c1_i32_41 dim 0 : vector<32x64xf32>, i32 -> vector<32x64xf32>
    %45 = vector.broadcast %1 : vector<32x1xf32> to vector<32x64xf32>
    %46 = arith.mulf %44, %45 : vector<32x64xf32>
    %c31_i32_42 = arith.constant 31 : i32
    %47 = tpu.dynamic_rotate %35 by %c31_i32_42 dim 0 : vector<32x64xf32>, i32 -> vector<32x64xf32>
    %48 = vector.broadcast %3 : vector<32x1xf32> to vector<32x64xf32>
    %49 = arith.mulf %47, %48 : vector<32x64xf32>
    %cst_43 = arith.constant dense<0.000000e+00> : vector<32x64xf32>
    %50 = tpu.matmul %46, %37, %cst_43 {dimension_numbers = #tpu.dot_dimension_numbers<[1], [0], [0], [1], [0, 0, 1, 1], [], []>} : vector<32x64xf32>, vector<64x64xf32>, vector<32x64xf32> -> vector<32x64xf32>
    %cst_44 = arith.constant dense<0.000000e+00> : vector<32x64xf32>
    %51 = tpu.matmul %35, %39, %cst_44 {dimension_numbers = #tpu.dot_dimension_numbers<[1], [0], [0], [1], [0, 0, 1, 1], [], []>} : vector<32x64xf32>, vector<64x64xf32>, vector<32x64xf32> -> vector<32x64xf32>
    %52 = arith.addf %50, %51 : vector<32x64xf32>
    %cst_45 = arith.constant dense<0.000000e+00> : vector<32x64xf32>
    %53 = tpu.matmul %49, %41, %cst_45 {dimension_numbers = #tpu.dot_dimension_numbers<[1], [0], [0], [1], [0, 0, 1, 1], [], []>} : vector<32x64xf32>, vector<64x64xf32>, vector<32x64xf32> -> vector<32x64xf32>
    %54 = arith.addf %52, %53 : vector<32x64xf32>
    %55 = vector.broadcast %43 : vector<1x64xf32> to vector<32x64xf32>
    %56 = arith.addf %54, %55 : vector<32x64xf32>
    %cst_46 = arith.constant 0.000000e+00 : f32
    %57 = vector.broadcast %cst_46 : f32 to vector<32x64xf32>
    %58 = arith.maximumf %56, %57 : vector<32x64xf32>
    %c1_47 = arith.constant 1 : index
    %c0_48 = arith.constant 0 : index
    %c0_49 = arith.constant 0 : index
    %c0_50 = arith.constant 0 : index
    %59 = vector.load %arg3[%c1_47, %c0_48, %c0_49, %c0_50] : memref<7x3x64x64xf32, #tpu.memory_space<vmem>>, vector<1x1x64x64xf32>
    %60 = vector.shape_cast %59 : vector<1x1x64x64xf32> to vector<64x64xf32>
    %c1_51 = arith.constant 1 : index
    %c1_52 = arith.constant 1 : index
    %c0_53 = arith.constant 0 : index
    %c0_54 = arith.constant 0 : index
    %61 = vector.load %arg3[%c1_51, %c1_52, %c0_53, %c0_54] : memref<7x3x64x64xf32, #tpu.memory_space<vmem>>, vector<1x1x64x64xf32>
    %62 = vector.shape_cast %61 : vector<1x1x64x64xf32> to vector<64x64xf32>
    %c1_55 = arith.constant 1 : index
    %c2_56 = arith.constant 2 : index
    %c0_57 = arith.constant 0 : index
    %c0_58 = arith.constant 0 : index
    %63 = vector.load %arg3[%c1_55, %c2_56, %c0_57, %c0_58] : memref<7x3x64x64xf32, #tpu.memory_space<vmem>>, vector<1x1x64x64xf32>
    %64 = vector.shape_cast %63 : vector<1x1x64x64xf32> to vector<64x64xf32>
    %c2_59 = arith.constant 2 : index
    %c0_60 = arith.constant 0 : index
    %c0_61 = arith.constant 0 : index
    %65 = vector.load %arg4[%c2_59, %c0_60, %c0_61] : memref<8x1x64xf32, #tpu.memory_space<vmem>>, vector<1x1x64xf32>
    %66 = vector.shape_cast %65 : vector<1x1x64xf32> to vector<1x64xf32>
    %c1_i32_62 = arith.constant 1 : i32
    %67 = tpu.dynamic_rotate %58 by %c1_i32_62 dim 0 : vector<32x64xf32>, i32 -> vector<32x64xf32>
    %68 = vector.broadcast %1 : vector<32x1xf32> to vector<32x64xf32>
    %69 = arith.mulf %67, %68 : vector<32x64xf32>
    %c31_i32_63 = arith.constant 31 : i32
    %70 = tpu.dynamic_rotate %58 by %c31_i32_63 dim 0 : vector<32x64xf32>, i32 -> vector<32x64xf32>
    %71 = vector.broadcast %3 : vector<32x1xf32> to vector<32x64xf32>
    %72 = arith.mulf %70, %71 : vector<32x64xf32>
    %cst_64 = arith.constant dense<0.000000e+00> : vector<32x64xf32>
    %73 = tpu.matmul %69, %60, %cst_64 {dimension_numbers = #tpu.dot_dimension_numbers<[1], [0], [0], [1], [0, 0, 1, 1], [], []>} : vector<32x64xf32>, vector<64x64xf32>, vector<32x64xf32> -> vector<32x64xf32>
    %cst_65 = arith.constant dense<0.000000e+00> : vector<32x64xf32>
    %74 = tpu.matmul %58, %62, %cst_65 {dimension_numbers = #tpu.dot_dimension_numbers<[1], [0], [0], [1], [0, 0, 1, 1], [], []>} : vector<32x64xf32>, vector<64x64xf32>, vector<32x64xf32> -> vector<32x64xf32>
    %75 = arith.addf %73, %74 : vector<32x64xf32>
    %cst_66 = arith.constant dense<0.000000e+00> : vector<32x64xf32>
    %76 = tpu.matmul %72, %64, %cst_66 {dimension_numbers = #tpu.dot_dimension_numbers<[1], [0], [0], [1], [0, 0, 1, 1], [], []>} : vector<32x64xf32>, vector<64x64xf32>, vector<32x64xf32> -> vector<32x64xf32>
    %77 = arith.addf %75, %76 : vector<32x64xf32>
    %78 = vector.broadcast %66 : vector<1x64xf32> to vector<32x64xf32>
    %79 = arith.addf %77, %78 : vector<32x64xf32>
    %cst_67 = arith.constant 0.000000e+00 : f32
    %80 = vector.broadcast %cst_67 : f32 to vector<32x64xf32>
    %81 = arith.maximumf %79, %80 : vector<32x64xf32>
    %82 = vector.shape_cast %81 : vector<32x64xf32> to vector<16x2x64xf32>
    %cst_68 = arith.constant dense<0xFF800000> : vector<16x64xf32>
    %83 = vector.multi_reduction <maximumf>, %82, %cst_68 [1] : vector<16x2x64xf32> to vector<16x64xf32>
    %c2_69 = arith.constant 2 : index
    %c0_70 = arith.constant 0 : index
    %c0_71 = arith.constant 0 : index
    %c0_72 = arith.constant 0 : index
    %84 = vector.load %arg3[%c2_69, %c0_70, %c0_71, %c0_72] : memref<7x3x64x64xf32, #tpu.memory_space<vmem>>, vector<1x1x64x64xf32>
    %85 = vector.shape_cast %84 : vector<1x1x64x64xf32> to vector<64x64xf32>
    %c2_73 = arith.constant 2 : index
    %c1_74 = arith.constant 1 : index
    %c0_75 = arith.constant 0 : index
    %c0_76 = arith.constant 0 : index
    %86 = vector.load %arg3[%c2_73, %c1_74, %c0_75, %c0_76] : memref<7x3x64x64xf32, #tpu.memory_space<vmem>>, vector<1x1x64x64xf32>
    %87 = vector.shape_cast %86 : vector<1x1x64x64xf32> to vector<64x64xf32>
    %c2_77 = arith.constant 2 : index
    %c2_78 = arith.constant 2 : index
    %c0_79 = arith.constant 0 : index
    %c0_80 = arith.constant 0 : index
    %88 = vector.load %arg3[%c2_77, %c2_78, %c0_79, %c0_80] : memref<7x3x64x64xf32, #tpu.memory_space<vmem>>, vector<1x1x64x64xf32>
    %89 = vector.shape_cast %88 : vector<1x1x64x64xf32> to vector<64x64xf32>
    %c3 = arith.constant 3 : index
    %c0_81 = arith.constant 0 : index
    %c0_82 = arith.constant 0 : index
    %90 = vector.load %arg4[%c3, %c0_81, %c0_82] : memref<8x1x64xf32, #tpu.memory_space<vmem>>, vector<1x1x64xf32>
    %91 = vector.shape_cast %90 : vector<1x1x64xf32> to vector<1x64xf32>
    %c1_i32_83 = arith.constant 1 : i32
    %92 = tpu.dynamic_rotate %83 by %c1_i32_83 dim 0 : vector<16x64xf32>, i32 -> vector<16x64xf32>
    %93 = vector.broadcast %5 : vector<16x1xf32> to vector<16x64xf32>
    %94 = arith.mulf %92, %93 : vector<16x64xf32>
    %c15_i32 = arith.constant 15 : i32
    %95 = tpu.dynamic_rotate %83 by %c15_i32 dim 0 : vector<16x64xf32>, i32 -> vector<16x64xf32>
    %96 = vector.broadcast %7 : vector<16x1xf32> to vector<16x64xf32>
    %97 = arith.mulf %95, %96 : vector<16x64xf32>
    %cst_84 = arith.constant dense<0.000000e+00> : vector<16x64xf32>
    %98 = tpu.matmul %94, %85, %cst_84 {dimension_numbers = #tpu.dot_dimension_numbers<[1], [0], [0], [1], [0, 0, 1, 1], [], []>} : vector<16x64xf32>, vector<64x64xf32>, vector<16x64xf32> -> vector<16x64xf32>
    %cst_85 = arith.constant dense<0.000000e+00> : vector<16x64xf32>
    %99 = tpu.matmul %83, %87, %cst_85 {dimension_numbers = #tpu.dot_dimension_numbers<[1], [0], [0], [1], [0, 0, 1, 1], [], []>} : vector<16x64xf32>, vector<64x64xf32>, vector<16x64xf32> -> vector<16x64xf32>
    %100 = arith.addf %98, %99 : vector<16x64xf32>
    %cst_86 = arith.constant dense<0.000000e+00> : vector<16x64xf32>
    %101 = tpu.matmul %97, %89, %cst_86 {dimension_numbers = #tpu.dot_dimension_numbers<[1], [0], [0], [1], [0, 0, 1, 1], [], []>} : vector<16x64xf32>, vector<64x64xf32>, vector<16x64xf32> -> vector<16x64xf32>
    %102 = arith.addf %100, %101 : vector<16x64xf32>
    %103 = vector.broadcast %91 : vector<1x64xf32> to vector<16x64xf32>
    %104 = arith.addf %102, %103 : vector<16x64xf32>
    %cst_87 = arith.constant 0.000000e+00 : f32
    %105 = vector.broadcast %cst_87 : f32 to vector<16x64xf32>
    %106 = arith.maximumf %104, %105 : vector<16x64xf32>
    %c3_88 = arith.constant 3 : index
    %c0_89 = arith.constant 0 : index
    %c0_90 = arith.constant 0 : index
    %c0_91 = arith.constant 0 : index
    %107 = vector.load %arg3[%c3_88, %c0_89, %c0_90, %c0_91] : memref<7x3x64x64xf32, #tpu.memory_space<vmem>>, vector<1x1x64x64xf32>
    %108 = vector.shape_cast %107 : vector<1x1x64x64xf32> to vector<64x64xf32>
    %c3_92 = arith.constant 3 : index
    %c1_93 = arith.constant 1 : index
    %c0_94 = arith.constant 0 : index
    %c0_95 = arith.constant 0 : index
    %109 = vector.load %arg3[%c3_92, %c1_93, %c0_94, %c0_95] : memref<7x3x64x64xf32, #tpu.memory_space<vmem>>, vector<1x1x64x64xf32>
    %110 = vector.shape_cast %109 : vector<1x1x64x64xf32> to vector<64x64xf32>
    %c3_96 = arith.constant 3 : index
    %c2_97 = arith.constant 2 : index
    %c0_98 = arith.constant 0 : index
    %c0_99 = arith.constant 0 : index
    %111 = vector.load %arg3[%c3_96, %c2_97, %c0_98, %c0_99] : memref<7x3x64x64xf32, #tpu.memory_space<vmem>>, vector<1x1x64x64xf32>
    %112 = vector.shape_cast %111 : vector<1x1x64x64xf32> to vector<64x64xf32>
    %c4 = arith.constant 4 : index
    %c0_100 = arith.constant 0 : index
    %c0_101 = arith.constant 0 : index
    %113 = vector.load %arg4[%c4, %c0_100, %c0_101] : memref<8x1x64xf32, #tpu.memory_space<vmem>>, vector<1x1x64xf32>
    %114 = vector.shape_cast %113 : vector<1x1x64xf32> to vector<1x64xf32>
    %c1_i32_102 = arith.constant 1 : i32
    %115 = tpu.dynamic_rotate %106 by %c1_i32_102 dim 0 : vector<16x64xf32>, i32 -> vector<16x64xf32>
    %116 = vector.broadcast %5 : vector<16x1xf32> to vector<16x64xf32>
    %117 = arith.mulf %115, %116 : vector<16x64xf32>
    %c15_i32_103 = arith.constant 15 : i32
    %118 = tpu.dynamic_rotate %106 by %c15_i32_103 dim 0 : vector<16x64xf32>, i32 -> vector<16x64xf32>
    %119 = vector.broadcast %7 : vector<16x1xf32> to vector<16x64xf32>
    %120 = arith.mulf %118, %119 : vector<16x64xf32>
    %cst_104 = arith.constant dense<0.000000e+00> : vector<16x64xf32>
    %121 = tpu.matmul %117, %108, %cst_104 {dimension_numbers = #tpu.dot_dimension_numbers<[1], [0], [0], [1], [0, 0, 1, 1], [], []>} : vector<16x64xf32>, vector<64x64xf32>, vector<16x64xf32> -> vector<16x64xf32>
    %cst_105 = arith.constant dense<0.000000e+00> : vector<16x64xf32>
    %122 = tpu.matmul %106, %110, %cst_105 {dimension_numbers = #tpu.dot_dimension_numbers<[1], [0], [0], [1], [0, 0, 1, 1], [], []>} : vector<16x64xf32>, vector<64x64xf32>, vector<16x64xf32> -> vector<16x64xf32>
    %123 = arith.addf %121, %122 : vector<16x64xf32>
    %cst_106 = arith.constant dense<0.000000e+00> : vector<16x64xf32>
    %124 = tpu.matmul %120, %112, %cst_106 {dimension_numbers = #tpu.dot_dimension_numbers<[1], [0], [0], [1], [0, 0, 1, 1], [], []>} : vector<16x64xf32>, vector<64x64xf32>, vector<16x64xf32> -> vector<16x64xf32>
    %125 = arith.addf %123, %124 : vector<16x64xf32>
    %126 = vector.broadcast %114 : vector<1x64xf32> to vector<16x64xf32>
    %127 = arith.addf %125, %126 : vector<16x64xf32>
    %cst_107 = arith.constant 0.000000e+00 : f32
    %128 = vector.broadcast %cst_107 : f32 to vector<16x64xf32>
    %129 = arith.maximumf %127, %128 : vector<16x64xf32>
    %c4_108 = arith.constant 4 : index
    %c0_109 = arith.constant 0 : index
    %c0_110 = arith.constant 0 : index
    %c0_111 = arith.constant 0 : index
    %130 = vector.load %arg3[%c4_108, %c0_109, %c0_110, %c0_111] : memref<7x3x64x64xf32, #tpu.memory_space<vmem>>, vector<1x1x64x64xf32>
    %131 = vector.shape_cast %130 : vector<1x1x64x64xf32> to vector<64x64xf32>
    %c4_112 = arith.constant 4 : index
    %c1_113 = arith.constant 1 : index
    %c0_114 = arith.constant 0 : index
    %c0_115 = arith.constant 0 : index
    %132 = vector.load %arg3[%c4_112, %c1_113, %c0_114, %c0_115] : memref<7x3x64x64xf32, #tpu.memory_space<vmem>>, vector<1x1x64x64xf32>
    %133 = vector.shape_cast %132 : vector<1x1x64x64xf32> to vector<64x64xf32>
    %c4_116 = arith.constant 4 : index
    %c2_117 = arith.constant 2 : index
    %c0_118 = arith.constant 0 : index
    %c0_119 = arith.constant 0 : index
    %134 = vector.load %arg3[%c4_116, %c2_117, %c0_118, %c0_119] : memref<7x3x64x64xf32, #tpu.memory_space<vmem>>, vector<1x1x64x64xf32>
    %135 = vector.shape_cast %134 : vector<1x1x64x64xf32> to vector<64x64xf32>
    %c5 = arith.constant 5 : index
    %c0_120 = arith.constant 0 : index
    %c0_121 = arith.constant 0 : index
    %136 = vector.load %arg4[%c5, %c0_120, %c0_121] : memref<8x1x64xf32, #tpu.memory_space<vmem>>, vector<1x1x64xf32>
    %137 = vector.shape_cast %136 : vector<1x1x64xf32> to vector<1x64xf32>
    %c1_i32_122 = arith.constant 1 : i32
    %138 = tpu.dynamic_rotate %129 by %c1_i32_122 dim 0 : vector<16x64xf32>, i32 -> vector<16x64xf32>
    %139 = vector.broadcast %5 : vector<16x1xf32> to vector<16x64xf32>
    %140 = arith.mulf %138, %139 : vector<16x64xf32>
    %c15_i32_123 = arith.constant 15 : i32
    %141 = tpu.dynamic_rotate %129 by %c15_i32_123 dim 0 : vector<16x64xf32>, i32 -> vector<16x64xf32>
    %142 = vector.broadcast %7 : vector<16x1xf32> to vector<16x64xf32>
    %143 = arith.mulf %141, %142 : vector<16x64xf32>
    %cst_124 = arith.constant dense<0.000000e+00> : vector<16x64xf32>
    %144 = tpu.matmul %140, %131, %cst_124 {dimension_numbers = #tpu.dot_dimension_numbers<[1], [0], [0], [1], [0, 0, 1, 1], [], []>} : vector<16x64xf32>, vector<64x64xf32>, vector<16x64xf32> -> vector<16x64xf32>
    %cst_125 = arith.constant dense<0.000000e+00> : vector<16x64xf32>
    %145 = tpu.matmul %129, %133, %cst_125 {dimension_numbers = #tpu.dot_dimension_numbers<[1], [0], [0], [1], [0, 0, 1, 1], [], []>} : vector<16x64xf32>, vector<64x64xf32>, vector<16x64xf32> -> vector<16x64xf32>
    %146 = arith.addf %144, %145 : vector<16x64xf32>
    %cst_126 = arith.constant dense<0.000000e+00> : vector<16x64xf32>
    %147 = tpu.matmul %143, %135, %cst_126 {dimension_numbers = #tpu.dot_dimension_numbers<[1], [0], [0], [1], [0, 0, 1, 1], [], []>} : vector<16x64xf32>, vector<64x64xf32>, vector<16x64xf32> -> vector<16x64xf32>
    %148 = arith.addf %146, %147 : vector<16x64xf32>
    %149 = vector.broadcast %137 : vector<1x64xf32> to vector<16x64xf32>
    %150 = arith.addf %148, %149 : vector<16x64xf32>
    %cst_127 = arith.constant 0.000000e+00 : f32
    %151 = vector.broadcast %cst_127 : f32 to vector<16x64xf32>
    %152 = arith.maximumf %150, %151 : vector<16x64xf32>
    %153 = vector.shape_cast %152 : vector<16x64xf32> to vector<8x2x64xf32>
    %cst_128 = arith.constant dense<0xFF800000> : vector<8x64xf32>
    %154 = vector.multi_reduction <maximumf>, %153, %cst_128 [1] : vector<8x2x64xf32> to vector<8x64xf32>
    %c5_129 = arith.constant 5 : index
    %c0_130 = arith.constant 0 : index
    %c0_131 = arith.constant 0 : index
    %c0_132 = arith.constant 0 : index
    %155 = vector.load %arg3[%c5_129, %c0_130, %c0_131, %c0_132] : memref<7x3x64x64xf32, #tpu.memory_space<vmem>>, vector<1x1x64x64xf32>
    %156 = vector.shape_cast %155 : vector<1x1x64x64xf32> to vector<64x64xf32>
    %c5_133 = arith.constant 5 : index
    %c1_134 = arith.constant 1 : index
    %c0_135 = arith.constant 0 : index
    %c0_136 = arith.constant 0 : index
    %157 = vector.load %arg3[%c5_133, %c1_134, %c0_135, %c0_136] : memref<7x3x64x64xf32, #tpu.memory_space<vmem>>, vector<1x1x64x64xf32>
    %158 = vector.shape_cast %157 : vector<1x1x64x64xf32> to vector<64x64xf32>
    %c5_137 = arith.constant 5 : index
    %c2_138 = arith.constant 2 : index
    %c0_139 = arith.constant 0 : index
    %c0_140 = arith.constant 0 : index
    %159 = vector.load %arg3[%c5_137, %c2_138, %c0_139, %c0_140] : memref<7x3x64x64xf32, #tpu.memory_space<vmem>>, vector<1x1x64x64xf32>
    %160 = vector.shape_cast %159 : vector<1x1x64x64xf32> to vector<64x64xf32>
    %c6 = arith.constant 6 : index
    %c0_141 = arith.constant 0 : index
    %c0_142 = arith.constant 0 : index
    %161 = vector.load %arg4[%c6, %c0_141, %c0_142] : memref<8x1x64xf32, #tpu.memory_space<vmem>>, vector<1x1x64xf32>
    %162 = vector.shape_cast %161 : vector<1x1x64xf32> to vector<1x64xf32>
    %c1_i32_143 = arith.constant 1 : i32
    %163 = tpu.dynamic_rotate %154 by %c1_i32_143 dim 0 : vector<8x64xf32>, i32 -> vector<8x64xf32>
    %164 = vector.broadcast %9 : vector<8x1xf32> to vector<8x64xf32>
    %165 = arith.mulf %163, %164 : vector<8x64xf32>
    %c7_i32 = arith.constant 7 : i32
    %166 = tpu.dynamic_rotate %154 by %c7_i32 dim 0 : vector<8x64xf32>, i32 -> vector<8x64xf32>
    %167 = vector.broadcast %11 : vector<8x1xf32> to vector<8x64xf32>
    %168 = arith.mulf %166, %167 : vector<8x64xf32>
    %cst_144 = arith.constant dense<0.000000e+00> : vector<8x64xf32>
    %169 = tpu.matmul %165, %156, %cst_144 {dimension_numbers = #tpu.dot_dimension_numbers<[1], [0], [0], [1], [0, 0, 1, 1], [], []>} : vector<8x64xf32>, vector<64x64xf32>, vector<8x64xf32> -> vector<8x64xf32>
    %cst_145 = arith.constant dense<0.000000e+00> : vector<8x64xf32>
    %170 = tpu.matmul %154, %158, %cst_145 {dimension_numbers = #tpu.dot_dimension_numbers<[1], [0], [0], [1], [0, 0, 1, 1], [], []>} : vector<8x64xf32>, vector<64x64xf32>, vector<8x64xf32> -> vector<8x64xf32>
    %171 = arith.addf %169, %170 : vector<8x64xf32>
    %cst_146 = arith.constant dense<0.000000e+00> : vector<8x64xf32>
    %172 = tpu.matmul %168, %160, %cst_146 {dimension_numbers = #tpu.dot_dimension_numbers<[1], [0], [0], [1], [0, 0, 1, 1], [], []>} : vector<8x64xf32>, vector<64x64xf32>, vector<8x64xf32> -> vector<8x64xf32>
    %173 = arith.addf %171, %172 : vector<8x64xf32>
    %174 = vector.broadcast %162 : vector<1x64xf32> to vector<8x64xf32>
    %175 = arith.addf %173, %174 : vector<8x64xf32>
    %cst_147 = arith.constant 0.000000e+00 : f32
    %176 = vector.broadcast %cst_147 : f32 to vector<8x64xf32>
    %177 = arith.maximumf %175, %176 : vector<8x64xf32>
    %c6_148 = arith.constant 6 : index
    %c0_149 = arith.constant 0 : index
    %c0_150 = arith.constant 0 : index
    %c0_151 = arith.constant 0 : index
    %178 = vector.load %arg3[%c6_148, %c0_149, %c0_150, %c0_151] : memref<7x3x64x64xf32, #tpu.memory_space<vmem>>, vector<1x1x64x64xf32>
    %179 = vector.shape_cast %178 : vector<1x1x64x64xf32> to vector<64x64xf32>
    %c6_152 = arith.constant 6 : index
    %c1_153 = arith.constant 1 : index
    %c0_154 = arith.constant 0 : index
    %c0_155 = arith.constant 0 : index
    %180 = vector.load %arg3[%c6_152, %c1_153, %c0_154, %c0_155] : memref<7x3x64x64xf32, #tpu.memory_space<vmem>>, vector<1x1x64x64xf32>
    %181 = vector.shape_cast %180 : vector<1x1x64x64xf32> to vector<64x64xf32>
    %c6_156 = arith.constant 6 : index
    %c2_157 = arith.constant 2 : index
    %c0_158 = arith.constant 0 : index
    %c0_159 = arith.constant 0 : index
    %182 = vector.load %arg3[%c6_156, %c2_157, %c0_158, %c0_159] : memref<7x3x64x64xf32, #tpu.memory_space<vmem>>, vector<1x1x64x64xf32>
    %183 = vector.shape_cast %182 : vector<1x1x64x64xf32> to vector<64x64xf32>
    %c7 = arith.constant 7 : index
    %c0_160 = arith.constant 0 : index
    %c0_161 = arith.constant 0 : index
    %184 = vector.load %arg4[%c7, %c0_160, %c0_161] : memref<8x1x64xf32, #tpu.memory_space<vmem>>, vector<1x1x64xf32>
    %185 = vector.shape_cast %184 : vector<1x1x64xf32> to vector<1x64xf32>
    %c1_i32_162 = arith.constant 1 : i32
    %186 = tpu.dynamic_rotate %177 by %c1_i32_162 dim 0 : vector<8x64xf32>, i32 -> vector<8x64xf32>
    %187 = vector.broadcast %9 : vector<8x1xf32> to vector<8x64xf32>
    %188 = arith.mulf %186, %187 : vector<8x64xf32>
    %c7_i32_163 = arith.constant 7 : i32
    %189 = tpu.dynamic_rotate %177 by %c7_i32_163 dim 0 : vector<8x64xf32>, i32 -> vector<8x64xf32>
    %190 = vector.broadcast %11 : vector<8x1xf32> to vector<8x64xf32>
    %191 = arith.mulf %189, %190 : vector<8x64xf32>
    %cst_164 = arith.constant dense<0.000000e+00> : vector<8x64xf32>
    %192 = tpu.matmul %188, %179, %cst_164 {dimension_numbers = #tpu.dot_dimension_numbers<[1], [0], [0], [1], [0, 0, 1, 1], [], []>} : vector<8x64xf32>, vector<64x64xf32>, vector<8x64xf32> -> vector<8x64xf32>
    %cst_165 = arith.constant dense<0.000000e+00> : vector<8x64xf32>
    %193 = tpu.matmul %177, %181, %cst_165 {dimension_numbers = #tpu.dot_dimension_numbers<[1], [0], [0], [1], [0, 0, 1, 1], [], []>} : vector<8x64xf32>, vector<64x64xf32>, vector<8x64xf32> -> vector<8x64xf32>
    %194 = arith.addf %192, %193 : vector<8x64xf32>
    %cst_166 = arith.constant dense<0.000000e+00> : vector<8x64xf32>
    %195 = tpu.matmul %191, %183, %cst_166 {dimension_numbers = #tpu.dot_dimension_numbers<[1], [0], [0], [1], [0, 0, 1, 1], [], []>} : vector<8x64xf32>, vector<64x64xf32>, vector<8x64xf32> -> vector<8x64xf32>
    %196 = arith.addf %194, %195 : vector<8x64xf32>
    %197 = vector.broadcast %185 : vector<1x64xf32> to vector<8x64xf32>
    %198 = arith.addf %196, %197 : vector<8x64xf32>
    %cst_167 = arith.constant 0.000000e+00 : f32
    %199 = vector.broadcast %cst_167 : f32 to vector<8x64xf32>
    %200 = arith.maximumf %198, %199 : vector<8x64xf32>
    %201 = vector.shape_cast %200 : vector<8x64xf32> to vector<4x2x64xf32>
    %cst_168 = arith.constant dense<0xFF800000> : vector<4x64xf32>
    %202 = vector.multi_reduction <maximumf>, %201, %cst_168 [1] : vector<4x2x64xf32> to vector<4x64xf32>
    %203 = tpu.iota {dimensions = array<i32: 0>} : vector<16x64xi32>
    %204 = tpu.iota {dimensions = array<i32: 1>} : vector<16x64xi32>
    %205 = arith.cmpi eq, %203, %204 : vector<16x64xi32>
    %206 = arith.extui %205 : vector<16x64xi1> to vector<16x64xi32>
    %207 = arith.sitofp %206 : vector<16x64xi32> to vector<16x64xf32>
    %cst_169 = arith.constant dense<0.000000e+00> : vector<16x4xf32>
    %208 = tpu.matmul %207, %202, %cst_169 {dimension_numbers = #tpu.dot_dimension_numbers<[1], [1], [0], [0], [0, 0, 1, 0], [], []>} : vector<16x64xf32>, vector<4x64xf32>, vector<16x4xf32> -> vector<16x4xf32>
    %c0_170 = arith.constant 0 : index
    %c0_171 = arith.constant 0 : index
    %c0_172 = arith.constant 0 : index
    %209 = vector.load %arg8[%c0_170, %c0_171, %c0_172] : memref<1x16x4xf32, #tpu.memory_space<vmem>>, vector<1x16x4xf32>
    %210 = vector.shape_cast %209 : vector<1x16x4xf32> to vector<16x4xf32>
    %211 = vector.shape_cast %208 : vector<16x4xf32> to vector<1x16x4xf32>
    tpu.vector_store %arg8[%c0_170, %c0_171, %c0_172], %211 {strides = array<i32>} : memref<1x16x4xf32, #tpu.memory_space<vmem>>, vector<1x16x4xf32>,
    return
  }
  func.func @transform_0(%arg0: i32) -> (i32, i32) {
    %c0_i32 = arith.constant 0 : i32
    %c0_i32_0 = arith.constant 0 : i32
    return %arg0, %c0_i32 : i32, i32
  }
  func.func @transform_1(%arg0: i32) -> (i32, i32, i32) {
    %c0_i32 = arith.constant 0 : i32
    %c0_i32_0 = arith.constant 0 : i32
    %c0_i32_1 = arith.constant 0 : i32
    %c0_i32_2 = arith.constant 0 : i32
    return %c0_i32, %c0_i32_0, %c0_i32_1 : i32, i32, i32
  }
  func.func @transform_2(%arg0: i32) -> (i32, i32, i32, i32) {
    %c0_i32 = arith.constant 0 : i32
    %c0_i32_0 = arith.constant 0 : i32
    %c0_i32_1 = arith.constant 0 : i32
    %c0_i32_2 = arith.constant 0 : i32
    %c0_i32_3 = arith.constant 0 : i32
    return %c0_i32, %c0_i32_0, %c0_i32_1, %c0_i32_2 : i32, i32, i32, i32
  }
  func.func @transform_3(%arg0: i32) -> (i32, i32, i32) {
    %c0_i32 = arith.constant 0 : i32
    %c0_i32_0 = arith.constant 0 : i32
    %c0_i32_1 = arith.constant 0 : i32
    %c0_i32_2 = arith.constant 0 : i32
    return %c0_i32, %c0_i32_0, %c0_i32_1 : i32, i32, i32
  }
  func.func @transform_4(%arg0: i32) -> (i32, i32) {
    %c0_i32 = arith.constant 0 : i32
    %c0_i32_0 = arith.constant 0 : i32
    %c0_i32_1 = arith.constant 0 : i32
    return %c0_i32, %c0_i32_0 : i32, i32
  }
  func.func @transform_5(%arg0: i32) -> (i32, i32) {
    %c0_i32 = arith.constant 0 : i32
    %c0_i32_0 = arith.constant 0 : i32
    %c0_i32_1 = arith.constant 0 : i32
    return %c0_i32, %c0_i32_0 : i32, i32
  }
  func.func @transform_6(%arg0: i32) -> (i32, i32) {
    %c0_i32 = arith.constant 0 : i32
    %c0_i32_0 = arith.constant 0 : i32
    %c0_i32_1 = arith.constant 0 : i32
    return %c0_i32, %c0_i32_0 : i32, i32
  }
  func.func @transform_7(%arg0: i32) -> (i32, i32, i32) {
    %c0_i32 = arith.constant 0 : i32
    %c0_i32_0 = arith.constant 0 : i32
    %c0_i32_1 = arith.constant 0 : i32
    return %arg0, %c0_i32, %c0_i32_0 : i32, i32, i32
  }
}

</mosaic_0001>

<bundles_post_ra>
// kernel: tpu_custom_call.1
= control target key start
LH: loop header
LB: loop body
LE: loop exit
PB: predicated region body
PF: predicated region fallthrough
CT: control target
= control target key end

     0   :  { %12 = vsyncpa [#allocation3], 0  ;;  %s4265_s24 = smov [#allocation2]   ;;  %s4733_s0 = inlined_call_operand.vmem [shape: f32[32,4], index: 0, kind: input, shape index: {}]   ;;  %s4734_s1 = inlined_call_operand.vmem [shape: f32[3,4,64], index: 1, kind: input, shape index: {}]   ;;  %s4735_s2 = inlined_call_operand.hbm [shape: f32[7,3,64,64], index: 2, kind: input, shape index: {}]   ;;  %s4736_s3 = inlined_call_operand.vmem [shape: f32[8,1,64], index: 3, kind: input, shape index: {}]   ;;  %s4737_s4 = inlined_call_operand.vmem [shape: f32[32,2], index: 4, kind: input, shape index: {}]   ;;  %s4738_s5 = inlined_call_operand.vmem [shape: f32[16,2], index: 5, kind: input, shape index: {}]   ;;  %s4739_s6 = inlined_call_operand.vmem [shape: f32[8,2], index: 6, kind: input, shape index: {}]   ;;  %s4740_s7 = inlined_call_operand.vmem [shape: f32[1,16,4], index: 7, kind: output, shape index: {}]  }
   0x1   :  { %s22_s25 = sshll.u32 %s4265_s24, 4  ;;  %s4241_s28 = scalar_lea.hbm %s4735_s2, 21504  ;;  %s23_s25 = int_to_ptr.vmem [resolvable:$true] %s22_s25 }
   0x2   :  { %p4242_p0 = scmp.ne.s32.totalorder %s4735_s2, %s4241_s28  ;;  %p4245_p1 = scmp.lt.u32.totalorder %s4241_s28, %s4735_s2 }
   0x4   :  { %p4247_p2 = pnand %p4245_p1, %p4242_p0 }
   0x6   :  { %4250 = shalt.err (!%p4247_p2)
}
   0x7   :  { %s4251_s10 = scalar_lea.vmem %s23_s25, 21504  ;;  %p4256_p4 = scmp.lt.s32.totalorder %s23_s25, %s23_s25 }
   0x8   :  { %p4252_p3 = scmp.ne.s32.totalorder %s23_s25, %s4251_s10  ;;  %p4257_p5 = scmp.lt.s32.totalorder %s4251_s10, %s4251_s10 }
   0xa   :  { %p4258_p6 = por %p4257_p5, %p4256_p4 }
   0xc   :  { %p4259_p7 = pnand %p4258_p6, %p4252_p3 }
   0xe   :  { %4262 = shalt.err (!%p4259_p7)
}
   0xf   :  { %s4266_s11 = smov 128   ;;  %s4267_s12 = smov 8  }
  0x10   :  { %28 = dma.hbm_to_vmem [thread:$0]  %s4735_s2, 21504, %s23_s25, [#allocation3], %s4266_s11, %s4266_s11, %s4267_s12  }
  0x11   :  { %4263 = dma.done.wait [#allocation3], 21504  }
  0x12   :  { %4264 = vsyncadd [#allocation3], 4294945792  ;;  %v4268_v0 = vmov 0   ;;  %v61_v1 = vlaneseq  ;;  %vm134_vm0 = vcmask 1043456   ;;  %vm121_vm1 = vcmask 31744   ;;  %v42_v3 = vld [vmem:[%s4737_s4 + $0x10] sm:$0xff] }
  0x13   :  { %4234 = vset.pattern.permute.xlu1 %v4268_v0  ;;  %4233 = vset.pattern.permute.xlu0 %v4268_v0  ;;  %v40_v4 = vld [vmem:[%s4737_s4] sm:$0xff]  ;;  %v43_v5 = vld [vmem:[%s4737_s4 + $0x18] sm:$0xff]  ;;  %v41_v6 = vld [vmem:[%s4737_s4 + $0x8] sm:$0xff]  ;;  %v4269_v25 = vmov 1   ;;  %vm493_vm4 = vcmask 523264   ;;  %vm1253_vm5 = vcmask 517120  }
  0x14   :  { %v4327_v2 = vshrl.u32 %v61_v1, 7  ;;  %80 = vperm.xlu1 %4234, %v42_v3   ;;  %70 = vperm.xlu0 %4233, %v40_v4   ;;  %v3111_v7 = vld [vmem:[%s4734_s1 + $0x4] sm:$0xf]  ;;  %v48_v10 = vld [vmem:[%s4733_s0 + $0x8] sm:$0xff]  ;;  %v51_v11 = vld [vmem:[%s4734_s1] sm:$0xf] }
  0x15   :  { %v47_v8 = vld [vmem:[%s4733_s0] sm:$0xff]  ;;  %3430 = vmatprep.subr.msk.mxu0 %vm134_vm0, %v3111_v7  ;;  %v49_v12 = vld [vmem:[%s4733_s0 + $0x10] sm:$0xff]  ;;  %v58_v13 = vrot.slane %v48_v10, 7  ;;  %v50_v15 = vld [vmem:[%s4733_s0 + $0x18] sm:$0xff]  ;;  %v93_v20 = vrot.slane %v48_v10, 1  ;;  %vm1411_vm6 = vcmask 1041409  }
  0x16   :  { %v57_v9 = vrot.slane %v47_v8, 7  ;;  %3432 = vmatprep.mubr.msk.f32.mxu0 %vm121_vm1, %v47_v8  ;;  %3431 = vmatpush3.msk.msra.mxu0 %vm134_vm0, %v3111_v7  ;;  %v59_v14 = vrot.slane %v49_v12, 7  ;;  %vm63_vm2 = vcmp.lt.s32.totalorder %v4327_v2, 1  ;;  %v60_v16 = vrot.slane %v50_v15, 7  ;;  %v3112_v23 = vld [vmem:[%s4734_s1 + $0x8] sm:$0xf] }
  0x17   :  { %3433 = vmatmul.mubr.msk.f32.vlgmr.msra.gmra.mrb[0].mxu0 %vm121_vm1, %v48_v10  ;;  %3438 = vmatprep.subr.msk.mxu0 %vm134_vm0, %v51_v11  ;;  %v92_v19 = vrot.slane %v47_v8, 1  ;;  %v94_v24 = vrot.slane %v49_v12, 1  ;;  %vm96_vm3 = vcmp.lt.s32.totalorder %v4327_v2, 7  ;;  %v95_v28 = vrot.slane %v50_v15, 1  ;;  %v450_v31 = vld [vmem:[#allocation2 + $0x40] sm:$0xff]  ;;  %v451_v32 = vld [vmem:[#allocation2 + $0x48] sm:$0xff] }
  0x18   :  { %85 = vperm.xlu1 %4234, %v43_v5   ;;  %75 = vperm.xlu0 %4233, %v41_v6   ;;  %v65_v17 = vsel %vm63_vm2, %v58_v13, %v59_v14  ;;  %v66_v18 = vsel %vm63_vm2, %v57_v9, %v58_v13  ;;  %v67_v21 = vsel %vm63_vm2, %v60_v16, %v57_v9  ;;  %v452_v33 = vld [vmem:[#allocation2 + $0x50] sm:$0xff]  ;;  %v453_v35 = vld [vmem:[#allocation2 + $0x58] sm:$0xff]  ;;  %v454_v37 = vld [vmem:[#allocation2 + $0x60] sm:$0xff]  ;;  %vm1413_vm7 = vcmask 1042434  }
  0x19   :  { %3439 = vmatpush3.msk.msra.mxu0 %vm134_vm0, %v51_v11  ;;  %3435 = vmatprep.mubr.msk.f32.mxu0 %vm121_vm1, %v49_v12  ;;  %v64_v22 = vsel %vm63_vm2, %v59_v14, %v60_v16  ;;  %v98_v26 = vsel %vm96_vm3, %v93_v20, %v94_v24  ;;  %v99_v27 = vsel %vm96_vm3, %v92_v19, %v93_v20  ;;  %v455_v38 = vld [vmem:[#allocation2 + $0x68] sm:$0xff]  ;;  %v456_v56 = vld [vmem:[#allocation2 + $0x70] sm:$0xff]  ;;  %v457_v57 = vld [vmem:[#allocation2 + $0x78] sm:$0xff]  ;;  %vm1415_vm8 = vcmask 1043459  }
  0x1a   :  { %3446 = vmatprep.subr.msk.mxu0 %vm134_vm0, %v3112_v23  ;;  %v97_v29 = vsel %vm96_vm3, %v94_v24, %v95_v28  ;;  %v100_v30 = vsel %vm96_vm3, %v95_v28, %v92_v19  ;;  %v3876_v34 = vpack.c.bf16 %v451_v32, %v450_v31  ;;  %v3880_v36 = vpack.c.bf16 %v453_v35, %v452_v33  ;;  %v441_v59 = vld [vmem:[#allocation2] sm:$0xff]  ;;  %v442_v60 = vld [vmem:[#allocation2 + $0x8] sm:$0xff]  ;;  %v443_v14 = vld [vmem:[#allocation2 + $0x10] sm:$0xff] }
  0x1b   :  { %3436 = vmatmul.mubr.msk.f32.gmra.mrb[2].mxu0 %vm121_vm1, %v50_v15  ;;  %v3884_v39 = vpack.c.bf16 %v455_v38, %v454_v37  ;;  %v3888_v58 = vpack.c.bf16 %v457_v57, %v456_v56  ;;  %v3892_v61 = vpack.c.bf16 %v442_v60, %v441_v59  ;;  %v813_v62 = vld [vmem:[#allocation2 + $0x100] sm:$0xff]  ;;  %v814_v63 = vld [vmem:[#allocation2 + $0x108] sm:$0xff]  ;;  %v444_v15 = vld [vmem:[#allocation2 + $0x18] sm:$0xff]  ;;  %vm1417_vm9 = vcmask 1044484  }
  0x1c   :  { %4236 = vset.pattern.permute.xlu1 %v4269_v25  ;;  %4235 = vset.pattern.permute.xlu0 %v4269_v25  ;;  %v818_v7 = vld [vmem:[#allocation2 + $0x128] sm:$0xff]  ;;  %v3128_v9 = vld [vmem:[%s4736_s3] ss:$0 sm:$0xff]  ;;  %v461_v60 = vld [vmem:[#allocation2 + $0x90] sm:$0xff]  ;;  %vm1419_vm10 = vcmask 1045509   ;;  %vm1421_vm11 = vcmask 1046534  }
  0x1d   :  { %106 = vperm.xlu1 %4236, %v41_v6   ;;  %102 = vperm.xlu0 %4235, %v40_v4   ;;  %v816_v4 = vld [vmem:[#allocation2 + $0x118] sm:$0xff]  ;;  %v817_v6 = vld [vmem:[#allocation2 + $0x120] sm:$0xff]  ;;  %vm1423_vm12 = vcmask 1047559   ;;  %vm4272_vm13 = vmmov 0  }
  0x1e   :  { %3877 = vmatprep.subr.bf16.mxu1 %v3876_v34  ;;  %v3932_v8 = vpack.c.bf16 %v818_v7, %v817_v6  ;;  %v445_v28 = vld [vmem:[#allocation2 + $0x20] sm:$0xff] }
  0x1f   :  { %3879 = vmatpush3.bf16.msra.mxu1 %v3876_v34  ;;  %v459_v57 = vld [vmem:[#allocation2 + $0x80] sm:$0xff] }
  0x20   :  { %3881 = vmatprep.subr.bf16.mxu1 %v3880_v36 }
  0x21   :  { %110 = vperm.xlu1 %4236, %v42_v3   ;;  %114 = vperm.xlu0 %4235, %v43_v5   ;;  %v3924_v3 = vpack.c.bf16 %v814_v63, %v813_v62 }
  0x23   :  { %3883 = vmatpush3.bf16.msra.mxu1 %v3880_v36 }
  0x24   :  { %3885 = vmatprep.subr.bf16.mxu1 %v3884_v39 }
  0x25   :  { %4237 = vset.pattern.permute.xlu1 %v4268_v0  ;;  %4238 = vset.pattern.permute.xlu0 %v4268_v0  ;;  %v815_v0 = vld [vmem:[#allocation2 + $0x110] sm:$0xff] }
  0x26   :  { %v3928_v5 = vpack.c.bf16 %v816_v4, %v815_v0  ;;  %v464_v4 = vld [vmem:[#allocation2 + $0xa8] sm:$0xff] }
  0x27   :  { %3887 = vmatpush3.bf16.msra.mxu1 %v3884_v39  ;;  %v447_v39 = vld [vmem:[#allocation2 + $0x30] sm:$0xff] }
  0x28   :  { %3889 = vmatprep.subr.bf16.mxu1 %v3888_v58 }
  0x2b   :  { %3891 = vmatpush3.bf16.msra.mxu1 %v3888_v58  ;;  %v460_v58 = vld [vmem:[#allocation2 + $0x88] sm:$0xff] }
  0x2c   :  { %3893 = vmatprep.subr.bf16.mxu1 %v3892_v61  ;;  %v3908_v59 = vpack.c.bf16 %v460_v58, %v459_v57 }
  0x93   :  { %v4391_v40 = vpop.permute.xlu1 %80  ;;  %v4393_v41 = vpop.permute.xlu0 %70 }
  0x94   :  { %v88_v42 = vmul.f32 %v4393_v41, %v67_v21  ;;  %v90_v46 = vmul.f32 %v4391_v40, %v65_v17 }
  0x96   :  { %3440 = vmatprep.mubr.msk.f32.mxu0 %vm121_vm1, %v88_v42  ;;  %v448_v42 = vld [vmem:[#allocation2 + $0x38] sm:$0xff] }
  0x97   :  { %v4397_v43 = vpop.permute.xlu1 %85  ;;  %v4399_v44 = vpop.permute.xlu0 %75 }
  0x98   :  { %v89_v45 = vmul.f32 %v4399_v44, %v66_v18  ;;  %v91_v47 = vmul.f32 %v4397_v43, %v64_v22 }
  0x9a   :  { %3441 = vmatmul.mubr.msk.f32.vlgmr.msra.gmra.mrb[0].mxu0 %vm121_vm1, %v89_v45 }
  0x9b   :  { %3443 = vmatprep.mubr.msk.f32.mxu0 %vm121_vm1, %v90_v46  ;;  %3447 = vmatpush3.msk.msra.mxu0 %vm134_vm0, %v3112_v23  ;;  %v3896_v23 = vpack.c.bf16 %v444_v15, %v443_v14  ;;  %v819_v14 = vld [vmem:[#allocation2 + $0x130] sm:$0xff]  ;;  %v820_v15 = vld [vmem:[#allocation2 + $0x138] sm:$0xff] }
  0x9c   :  { %v4407_v48 = vpop.permute.xlu1 %106  ;;  %v4409_v49 = vpop.permute.xlu0 %102  ;;  %3925 = vmatprep.subr.bf16.mxu0 %v3924_v3 }
  0x9d   :  { %v117_v50 = vmul.f32 %v4409_v49, %v99_v27  ;;  %v118_v51 = vmul.f32 %v4407_v48, %v98_v26 }
  0x9e   :  { %3444 = vmatmul.mubr.msk.f32.gmra.mrb[2].mxu0 %vm121_vm1, %v91_v47 }
  0x9f   :  { %3448 = vmatprep.mubr.msk.f32.mxu0 %vm121_vm1, %v117_v50 }
  0xa0   :  { %v4415_v52 = vpop.permute.xlu1 %110  ;;  %v4418_v54 = vpop.permute.xlu0 %114 }
  0xa1   :  { %v119_v53 = vmul.f32 %v4415_v52, %v97_v29  ;;  %v120_v55 = vmul.f32 %v4418_v54, %v100_v30  ;;  %v446_v29 = vld [vmem:[#allocation2 + $0x28] sm:$0xff] }
  0xa2   :  { %3449 = vmatmul.mubr.msk.f32.vlgmr.msra.gmra.mrb[0].mxu0 %vm121_vm1, %v118_v51  ;;  %v3900_v36 = vpack.c.bf16 %v446_v29, %v445_v28  ;;  %v806_v29 = vld [vmem:[#allocation2 + $0xd0] sm:$0xff] }
  0xa3   :  { %3451 = vmatprep.mubr.msk.f32.mxu0 %vm121_vm1, %v119_v53  ;;  %3927 = vmatpush3.bf16.msra.mxu0 %v3924_v3  ;;  %v463_v3 = vld [vmem:[#allocation2 + $0xa0] sm:$0xff] }
  0xa4   :  { %3929 = vmatprep.subr.bf16.mxu0 %v3928_v5  ;;  %v3916_v6 = vpack.c.bf16 %v464_v4, %v463_v3 }
  0xa6   :  { %3452 = vmatmul.mubr.msk.f32.gmra.mrb[2].mxu0 %vm121_vm1, %v120_v55  ;;  %v3904_v55 = vpack.c.bf16 %v448_v42, %v447_v39 }
  0xa7   :  { %3931 = vmatpush3.bf16.msra.mxu0 %v3928_v5 }
  0xa8   :  { %3933 = vmatprep.subr.bf16.mxu0 %v3932_v8 }
  0xab   :  { %3935 = vmatpush3.bf16.msra.mxu0 %v3932_v8  ;;  %v465_v8 = vld [vmem:[#allocation2 + $0xb0] sm:$0xff] }
 0x175   :  { %v3450_v10 = vpop.f32.mrb[0].mxu0 }
 0x176   :  { %v434_v11 = vadd.f32 %v3450_v10, %v3128_v9  ;;  %v404_v12 = vpop.f32.mrb[1].mxu0 }
 0x177   :  { %v433_v13 = vadd.f32 %v3128_v9, %v404_v12 }
 0x178   :  { %v438_v16 = vmax.f32 %v434_v11, 0.0 }
 0x179   :  { %v437_v17 = vmax.f32 %v433_v13, 0.0  ;;  %v3453_v18 = vpop.f32.mrb[2].mxu0 }
 0x17a   :  { %v470_v19 = vrot.slane %v438_v16, 7  ;;  %v482_v20 = vrot.slane %v438_v16, 1  ;;  %v436_v21 = vadd.f32 %v3453_v18, %v3128_v9  ;;  %v414_v22 = vpop.f32.mrb[3].mxu0  ;;  %v805_v18 = vld [vmem:[#allocation2 + $0xc8] sm:$0xff] }
 0x17b   :  { %v469_v24 = vrot.slane %v437_v17, 7  ;;  %v481_v26 = vrot.slane %v437_v17, 1  ;;  %v435_v27 = vadd.f32 %v3128_v9, %v414_v22  ;;  %3470 = vmatprep.mubr.msk.f32.mxu1 %vm493_vm4, %v437_v17  ;;  %v466_v9 = vld [vmem:[#allocation2 + $0xb8] sm:$0xff]  ;;  %v804_v17 = vld [vmem:[#allocation2 + $0xc0] sm:$0xff] }
 0x17c   :  { %v440_v30 = vmax.f32 %v436_v21, 0.0  ;;  %3471 = vmatmul.mubr.msk.f32.vlgmr.msra.gmra.mrb[0].mxu1 %vm493_vm4, %v438_v16  ;;  %v3920_v10 = vpack.c.bf16 %v466_v9, %v465_v8  ;;  %v3936_v16 = vpack.c.bf16 %v820_v15, %v819_v14  ;;  %v45_v21 = vld [vmem:[%s4738_s5 + $0x8] sm:$0xff]  ;;  %v46_v22 = vld [vmem:[%s4739_s6] sm:$0xff] }
 0x17d   :  { %v475_v31 = vsel %vm63_vm2, %v469_v24, %v470_v19  ;;  %v439_v32 = vmax.f32 %v435_v27, 0.0  ;;  %3895 = vmatpush3.bf16.msra.mxu1 %v3892_v61  ;;  %v487_v33 = vsel %vm96_vm3, %v481_v26, %v482_v20  ;;  %v462_v61 = vld [vmem:[#allocation2 + $0x98] sm:$0xff]  ;;  %1445 = vperm.xlu0 %4238, %v45_v21   ;;  %v822_v8 = vld [vmem:[#allocation2 + $0x140] sm:$0xff]  ;;  %v823_v9 = vld [vmem:[#allocation2 + $0x148] sm:$0xff] }
 0x17e   :  { %v472_v34 = vrot.slane %v440_v30, 7  ;;  %v484_v35 = vrot.slane %v440_v30, 1  ;;  %3897 = vmatprep.subr.bf16.mxu1 %v3896_v23  ;;  %v478_v62 = vmul.f32 %v475_v31, %v4399_v44  ;;  %v3912_v63 = vpack.c.bf16 %v462_v61, %v461_v60  ;;  %3937 = vmatprep.subr.bf16.mxu0 %v3936_v16  ;;  %v810_v60 = vld [vmem:[#allocation2 + $0xf0] sm:$0xff]  ;;  %v811_v61 = vld [vmem:[#allocation2 + $0xf8] sm:$0xff]  ;;  %v826_v15 = vld [vmem:[#allocation2 + $0x160] sm:$0xff] }
 0x17f   :  { %v471_v37 = vrot.slane %v439_v32, 7  ;;  %v483_v38 = vrot.slane %v439_v32, 1  ;;  %3473 = vmatprep.mubr.msk.f32.mxu1 %vm493_vm4, %v439_v32  ;;  %v489_v7 = vmul.f32 %v487_v33, %v4409_v49  ;;  %3939 = vmatpush3.bf16.msra.mxu0 %v3936_v16  ;;  %v827_v16 = vld [vmem:[#allocation2 + $0x168] sm:$0xff] }
 0x180   :  { %3474 = vmatmul.mubr.msk.f32.gmra.mrb[2].mxu1 %vm493_vm4, %v440_v30  ;;  %v476_v45 = vsel %vm63_vm2, %v472_v34, %v469_v24  ;;  %v488_v46 = vsel %vm96_vm3, %v484_v35, %v481_v26  ;;  %v807_v30 = vld [vmem:[#allocation2 + $0xd8] sm:$0xff] }
 0x181   :  { %v486_v47 = vsel %vm96_vm3, %v482_v20, %v483_v38  ;;  %3899 = vmatpush3.bf16.msra.mxu1 %v3896_v23  ;;  %v477_v50 = vmul.f32 %v476_v45, %v4393_v41  ;;  %v474_v51 = vsel %vm63_vm2, %v470_v19, %v471_v37  ;;  %v473_v53 = vsel %vm63_vm2, %v471_v37, %v472_v34  ;;  %v44_v20 = vld [vmem:[%s4738_s5] sm:$0xff] }
 0x182   :  { %3901 = vmatprep.subr.bf16.mxu1 %v3900_v36  ;;  %v485_v56 = vsel %vm96_vm3, %v483_v38, %v484_v35  ;;  %v479_v0 = vmul.f32 %v474_v51, %v4391_v40  ;;  %v480_v5 = vmul.f32 %v473_v53, %v4397_v43  ;;  %v490_v11 = vmul.f32 %v486_v47, %v4407_v48  ;;  %v3142_v23 = vld [vmem:[%s4736_s3 + $0x1] ss:$0 sm:$0xff] }
 0x183   :  { %3492 = vmatprep.mubr.msk.f32.mxu1 %vm493_vm4, %v477_v50  ;;  %v491_v12 = vmul.f32 %v485_v56, %v4415_v52  ;;  %v492_v13 = vmul.f32 %v488_v46, %v4418_v54  ;;  %v3940_v19 = vpack.c.bf16 %v805_v18, %v804_v17  ;;  %1440 = vperm.xlu1 %4237, %v44_v20   ;;  %v808_v45 = vld [vmem:[#allocation2 + $0xe0] sm:$0xff]  ;;  %v809_v46 = vld [vmem:[#allocation2 + $0xe8] sm:$0xff] }
 0x184   :  { %2457 = vperm.xlu0 %4238, %v46_v22   ;;  %v3948_v57 = vpack.c.bf16 %v809_v46, %v808_v45  ;;  %v3964_v18 = vpack.c.bf16 %v827_v16, %v826_v15  ;;  %v1732_v45 = vld [vmem:[#allocation2 + $0x2a8] sm:$0xff] }
 0x185   :  { %3903 = vmatpush3.bf16.msra.mxu1 %v3900_v36  ;;  %3941 = vmatprep.subr.bf16.mxu0 %v3940_v19 }
 0x186   :  { %3905 = vmatprep.subr.bf16.mxu1 %v3904_v55 }
 0x187   :  { %4239 = vset.pattern.permute.xlu1 %v4269_v25 }
 0x188   :  { %1455 = vperm.xlu1 %4239, %v44_v20   ;;  %4240 = vset.pattern.permute.xlu0 %v4269_v25  ;;  %v3944_v25 = vpack.c.bf16 %v807_v30, %v806_v29  ;;  %v828_v20 = vld [vmem:[#allocation2 + $0x170] sm:$0xff] }
 0x189   :  { %3907 = vmatpush3.bf16.msra.mxu1 %v3904_v55  ;;  %v1382_v30 = vld [vmem:[#allocation2 + $0x1f0] sm:$0xff] }
 0x18a   :  { %3909 = vmatprep.subr.bf16.mxu1 %v3908_v59 }
 0x18c   :  { %3493 = vmatmul.mubr.msk.f32.vlgmr.msra.gmra.mrb[0].mxu1 %vm493_vm4, %v478_v62  ;;  %1459 = vperm.xlu1 %4239, %v45_v21   ;;  %v829_v21 = vld [vmem:[#allocation2 + $0x178] sm:$0xff] }
 0x18d   :  { %3495 = vmatprep.mubr.msk.f32.mxu1 %vm493_vm4, %v479_v0  ;;  %3911 = vmatpush3.bf16.msra.mxu1 %v3908_v59 }
 0x18e   :  { %3913 = vmatprep.subr.bf16.mxu1 %v3912_v63 }
 0x190   :  { %3496 = vmatmul.mubr.msk.f32.gmra.mrb[2].mxu1 %vm493_vm4, %v480_v5  ;;  %2463 = vperm.xlu1 %4239, %v46_v22   ;;  %v1376_v22 = vld [vmem:[#allocation2 + $0x1c0] sm:$0xff] }
 0x191   :  { %3915 = vmatpush3.bf16.msra.mxu1 %v3912_v63  ;;  %3514 = vmatprep.mubr.msk.f32.mxu1 %vm493_vm4, %v489_v7 }
 0x192   :  { %3917 = vmatprep.subr.bf16.mxu1 %v3916_v6 }
 0x195   :  { %3919 = vmatpush3.bf16.msra.mxu1 %v3916_v6  ;;  %v3952_v6 = vpack.c.bf16 %v811_v61, %v810_v60 }
 0x196   :  { %3921 = vmatprep.subr.bf16.mxu1 %v3920_v10 }
 0x199   :  { %3923 = vmatpush3.bf16.msra.mxu1 %v3920_v10  ;;  %v3956_v10 = vpack.c.bf16 %v823_v9, %v822_v8 }
 0x19c   :  { %3515 = vmatmul.mubr.msk.f32.vlgmr.msra.gmra.mrb[0].mxu1 %vm493_vm4, %v490_v11  ;;  %v824_v11 = vld [vmem:[#allocation2 + $0x150] sm:$0xff] }
 0x19d   :  { %3517 = vmatprep.mubr.msk.f32.mxu1 %vm493_vm4, %v491_v12 }
 0x1a0   :  { %3518 = vmatmul.mubr.msk.f32.gmra.mrb[2].mxu1 %vm493_vm4, %v492_v13 }
 0x26f   :  { %v3516_v24 = vpop.f32.mrb[0].mxu1 }
 0x270   :  { %v796_v26 = vadd.f32 %v3516_v24, %v3142_v23  ;;  %v766_v27 = vpop.f32.mrb[1].mxu1 }
 0x271   :  { %v795_v28 = vadd.f32 %v3142_v23, %v766_v27  ;;  %v1379_v27 = vld [vmem:[#allocation2 + $0x1d8] sm:$0xff] }
 0x272   :  { %v800_v31 = vmax.f32 %v796_v26, 0.0  ;;  %v1378_v26 = vld [vmem:[#allocation2 + $0x1d0] sm:$0xff] }
 0x273   :  { %v799_v32 = vmax.f32 %v795_v28, 0.0  ;;  %v3519_v33 = vpop.f32.mrb[2].mxu1  ;;  %v3976_v28 = vpack.c.bf16 %v1379_v27, %v1378_v26 }
 0x274   :  { %v833_v34 = vrot.slane %v800_v31, 7  ;;  %v845_v35 = vrot.slane %v800_v31, 1  ;;  %v798_v36 = vadd.f32 %v3519_v33, %v3142_v23  ;;  %v776_v37 = vpop.f32.mrb[3].mxu1  ;;  %v1368_v33 = vld [vmem:[#allocation2 + $0x188] sm:$0xff] }
 0x275   :  { %v832_v38 = vrot.slane %v799_v32, 7  ;;  %v844_v39 = vrot.slane %v799_v32, 1  ;;  %v797_v42 = vadd.f32 %v3142_v23, %v776_v37  ;;  %3536 = vmatprep.mubr.msk.f32.mxu0 %vm493_vm4, %v799_v32  ;;  %v1377_v23 = vld [vmem:[#allocation2 + $0x1c8] sm:$0xff]  ;;  %v1367_v32 = vld [vmem:[#allocation2 + $0x180] sm:$0xff]  ;;  %v1729_v37 = vld [vmem:[#allocation2 + $0x290] sm:$0xff] }
 0x276   :  { %v802_v47 = vmax.f32 %v798_v36, 0.0  ;;  %3537 = vmatmul.mubr.msk.f32.vlgmr.msra.gmra.mrb[4].mxu0 %vm493_vm4, %v800_v31  ;;  %v3972_v24 = vpack.c.bf16 %v1377_v23, %v1376_v22  ;;  %v1383_v31 = vld [vmem:[#allocation2 + $0x1f8] sm:$0xff]  ;;  %v1728_v36 = vld [vmem:[#allocation2 + $0x288] sm:$0xff] }
 0x277   :  { %v838_v50 = vsel %vm63_vm2, %v832_v38, %v833_v34  ;;  %v801_v51 = vmax.f32 %v797_v42, 0.0  ;;  %3943 = vmatpush3.bf16.msra.mxu0 %v3940_v19  ;;  %v850_v53 = vsel %vm96_vm3, %v844_v39, %v845_v35  ;;  %v1731_v42 = vld [vmem:[#allocation2 + $0x2a0] sm:$0xff] }
 0x278   :  { %v835_v55 = vrot.slane %v802_v47, 7  ;;  %v847_v56 = vrot.slane %v802_v47, 1  ;;  %3945 = vmatprep.subr.bf16.mxu0 %v3944_v25  ;;  %v841_v12 = vmul.f32 %v838_v50, %v4399_v44  ;;  %v852_v19 = vmul.f32 %v850_v53, %v4409_v49  ;;  %3973 = vmatprep.subr.bf16.mxu1 %v3972_v24  ;;  %v3156_v53 = vld [vmem:[%s4736_s3 + $0x2] ss:$0 sm:$0xff] }
 0x279   :  { %v834_v58 = vrot.slane %v801_v51, 7  ;;  %v846_v59 = vrot.slane %v801_v51, 1  ;;  %3539 = vmatprep.mubr.msk.f32.mxu0 %vm493_vm4, %v801_v51  ;;  %3975 = vmatpush3.bf16.msra.mxu1 %v3972_v24  ;;  %v4028_v46 = vpack.c.bf16 %v1732_v45, %v1731_v42 }
 0x27a   :  { %3540 = vmatmul.mubr.msk.f32.gmra.mrb[6].mxu0 %vm493_vm4, %v802_v47  ;;  %v839_v62 = vsel %vm63_vm2, %v835_v55, %v832_v38  ;;  %v851_v63 = vsel %vm96_vm3, %v847_v56, %v844_v39  ;;  %3977 = vmatprep.subr.bf16.mxu1 %v3976_v28  ;;  %v1730_v38 = vld [vmem:[#allocation2 + $0x298] sm:$0xff]  ;;  %v4270_v47 = vmov 1983009808  }
 0x27b   :  { %v849_v0 = vsel %vm96_vm3, %v845_v35, %v846_v59  ;;  %3947 = vmatpush3.bf16.msra.mxu0 %v3944_v25  ;;  %v840_v3 = vmul.f32 %v839_v62, %v4393_v41  ;;  %v837_v4 = vsel %vm63_vm2, %v833_v34, %v834_v58  ;;  %v836_v5 = vsel %vm63_vm2, %v834_v58, %v835_v55  ;;  %v825_v41 = vld [vmem:[#allocation2 + $0x158] sm:$0xff]  ;;  %v1727_v35 = vld [vmem:[#allocation2 + $0x280] sm:$0xff] }
 0x27c   :  { %3949 = vmatprep.subr.bf16.mxu0 %v3948_v57  ;;  %v848_v7 = vsel %vm96_vm3, %v846_v59, %v847_v56  ;;  %v3960_v13 = vpack.c.bf16 %v825_v41, %v824_v11  ;;  %v842_v14 = vmul.f32 %v837_v4, %v4391_v40  ;;  %v843_v17 = vmul.f32 %v836_v5, %v4397_v43 }
 0x27d   :  { %3558 = vmatprep.mubr.msk.f32.mxu0 %vm493_vm4, %v840_v3  ;;  %v3968_v40 = vpack.c.bf16 %v829_v21, %v828_v20  ;;  %v853_v44 = vmul.f32 %v849_v0, %v4407_v48  ;;  %v854_v43 = vmul.f32 %v848_v7, %v4415_v52  ;;  %v855_v49 = vmul.f32 %v851_v63, %v4418_v54  ;;  %v1380_v48 = vld [vmem:[#allocation2 + $0x1e0] sm:$0xff]  ;;  %v1381_v52 = vld [vmem:[#allocation2 + $0x1e8] sm:$0xff] }
 0x27e   :  { %3979 = vmatpush3.bf16.msra.mxu1 %v3976_v28  ;;  %v3980_v29 = vpack.c.bf16 %v1381_v52, %v1380_v48  ;;  %v3984_v54 = vpack.c.bf16 %v1383_v31, %v1382_v30  ;;  %v4513_v34 = vpack.c.bf16 %v1368_v33, %v1367_v32  ;;  %v4020_v25 = vpack.c.bf16 %v1728_v36, %v1727_v35 }
 0x27f   :  { %3951 = vmatpush3.bf16.msra.mxu0 %v3948_v57  ;;  %v4024_v39 = vpack.c.bf16 %v1730_v38, %v1729_v37  ;;  %v1171_v50 = vunpack.c.l.s4 %v4270_v47 }
 0x280   :  { %3953 = vmatprep.subr.bf16.mxu0 %v3952_v6  ;;  %3981 = vmatprep.subr.bf16.mxu1 %v3980_v29 }
 0x281   :  { %v1172_v51 = vunpack.c.0.s8 %v1171_v50 }
 0x282   :  { %3983 = vmatpush3.bf16.msra.mxu1 %v3980_v29 }
 0x283   :  { %3955 = vmatpush3.bf16.msra.mxu0 %v3952_v6  ;;  %3985 = vmatprep.subr.bf16.mxu1 %v3984_v54  ;;  %v4520_v57 = vsub.s32 %v1172_v51, %v4327_v2 }
 0x284   :  { %3957 = vmatprep.subr.bf16.mxu0 %v3956_v10 }
 0x286   :  { %3559 = vmatmul.mubr.msk.f32.vlgmr.msra.gmra.mrb[4].mxu0 %vm493_vm4, %v841_v12  ;;  %3987 = vmatpush3.bf16.msra.mxu1 %v3984_v54 }
 0x287   :  { %3561 = vmatprep.mubr.msk.f32.mxu0 %vm493_vm4, %v842_v14  ;;  %3959 = vmatpush3.bf16.msra.mxu0 %v3956_v10 }
 0x288   :  { %3961 = vmatprep.subr.bf16.mxu0 %v3960_v13  ;;  %3989 = vmatprep.subr.bf16.mxu1 %v4513_v34 }
 0x28a   :  { %3562 = vmatmul.mubr.msk.f32.gmra.mrb[6].mxu0 %vm493_vm4, %v843_v17 }
 0x28b   :  { %3963 = vmatpush3.bf16.msra.mxu0 %v3960_v13  ;;  %3580 = vmatprep.mubr.msk.f32.mxu0 %vm493_vm4, %v852_v19 }
 0x28c   :  { %3965 = vmatprep.subr.bf16.mxu0 %v3964_v18 }
 0x28f   :  { %3967 = vmatpush3.bf16.msra.mxu0 %v3964_v18 }
 0x290   :  { %3969 = vmatprep.subr.bf16.mxu0 %v3968_v40 }
 0x293   :  { %3971 = vmatpush3.bf16.msra.mxu0 %v3968_v40 }
 0x294   :  { %4021 = vmatprep.subr.bf16.mxu0 %v4020_v25 }
 0x296   :  { %3581 = vmatmul.mubr.msk.f32.vlgmr.msra.gmra.mrb[4].mxu0 %vm493_vm4, %v853_v44 }
 0x297   :  { %3583 = vmatprep.mubr.msk.f32.mxu0 %vm493_vm4, %v854_v43  ;;  %4023 = vmatpush3.bf16.msra.mxu0 %v4020_v25 }
 0x298   :  { %4025 = vmatprep.subr.bf16.mxu0 %v4024_v39 }
 0x29a   :  { %3584 = vmatmul.mubr.msk.f32.gmra.mrb[6].mxu0 %vm493_vm4, %v855_v49 }
 0x29b   :  { %4027 = vmatpush3.bf16.msra.mxu0 %v4024_v39 }
 0x29c   :  { %4029 = vmatprep.subr.bf16.mxu0 %v4028_v46 }
 0x29f   :  { %4031 = vmatpush3.bf16.msra.mxu0 %v4028_v46 }
 0x369   :  { %v3582_v55 = vpop.f32.mrb[4].mxu0 }
 0x36a   :  { %v1158_v56 = vadd.f32 %v3582_v55, %v3156_v53  ;;  %v1128_v58 = vpop.f32.mrb[5].mxu0 }
 0x36b   :  { %v1157_v59 = vadd.f32 %v3156_v53, %v1128_v58 }
 0x36c   :  { %v1162_v60 = vmax.f32 %v1158_v56, 0.0 }
 0x36d   :  { %v1161_v61 = vmax.f32 %v1157_v59, 0.0  ;;  %v3585_v62 = vpop.f32.mrb[6].mxu0 }
 0x36e   :  { %v1186_v63 = vcombine.high %v1162_v60, %v1162_v60  ;;  %v1193_v0 = vrot.slane %v1162_v60, %v4520_v57  ;;  %v1138_v3 = vpop.f32.mrb[7].mxu0  ;;  %v1160_v49 = vadd.f32 %v3585_v62, %v3156_v53 }
 0x36f   :  { %v1169_v4 = vcombine.high %v1161_v61, %v1161_v61  ;;  %v1176_v5 = vrot.slane %v1161_v61, %v4520_v57  ;;  %v1159_v38 = vadd.f32 %v3156_v53, %v1138_v3 }
 0x370   :  { %v1200_v6 = vrot.slane %v1186_v63, %v4520_v57  ;;  %v1201_v7 = vcombine.high %v1193_v0, %v1193_v0  ;;  %v1282_v8 = vsel %vm1253_vm5, %v1193_v0, -inf  ;;  %v1164_v32 = vmax.f32 %v1160_v49, 0.0 }
 0x371   :  { %v1283_v9 = vrot.slane %v1282_v8, 4  ;;  %v1183_v10 = vrot.slane %v1169_v4, %v4520_v57  ;;  %v1184_v11 = vcombine.high %v1176_v5, %v1176_v5  ;;  %v1254_v41 = vsel %vm1253_vm5, %v1176_v5, -inf }
 0x372   :  { %v1202_v12 = vcombine.high %v1200_v6, %v1200_v6  ;;  %v1289_v13 = vsel %vm1253_vm5, %v1201_v7, -inf  ;;  %v1296_v14 = vsel %vm1253_vm5, %v1200_v6, -inf  ;;  %v1255_v15 = vrot.slane %v1254_v41, 4 }
 0x373   :  { %v1284_v16 = vmax.f32 %v1282_v8, %v1283_v9  ;;  %v1290_v17 = vrot.slane %v1289_v13, 4  ;;  %v1185_v18 = vcombine.high %v1183_v10, %v1183_v10  ;;  %v1261_v20 = vsel %vm1253_vm5, %v1184_v11, -inf }
 0x374   :  { %v1256_v19 = vmax.f32 %v1254_v41, %v1255_v15  ;;  %v1268_v21 = vsel %vm1253_vm5, %v1183_v10, -inf  ;;  %v1297_v44 = vrot.slane %v1296_v14, 4  ;;  %v1303_v43 = vsel %vm1253_vm5, %v1202_v12, -inf }
 0x375   :  { %v1285_v40 = vrot.slane %v1284_v16, 2  ;;  %v1262_v23 = vrot.slane %v1261_v20, 4  ;;  %v1269_v24 = vrot.slane %v1268_v21, 4  ;;  %v1275_v26 = vsel %vm1253_vm5, %v1185_v18, -inf }
 0x376   :  { %v1257_v22 = vrot.slane %v1256_v19, 2  ;;  %v1291_v27 = vmax.f32 %v1289_v13, %v1290_v17  ;;  %v1276_v29 = vrot.slane %v1275_v26, 4  ;;  %v1298_v31 = vmax.f32 %v1296_v14, %v1297_v44 }
 0x377   :  { %v1263_v48 = vmax.f32 %v1261_v20, %v1262_v23  ;;  %v1270_v52 = vmax.f32 %v1268_v21, %v1269_v24  ;;  %v1286_v30 = vmax.f32 %v1284_v16, %v1285_v40  ;;  %v1304_v54 = vrot.slane %v1303_v43, 4 }
 0x378   :  { %v1258_v28 = vmax.f32 %v1256_v19, %v1257_v22  ;;  %v1277_v36 = vmax.f32 %v1275_v26, %v1276_v29  ;;  %v1292_v37 = vrot.slane %v1291_v27, 2  ;;  %v1299_v47 = vrot.slane %v1298_v31, 2 }
 0x379   :  { %v1264_v33 = vrot.slane %v1263_v48, 2  ;;  %v1271_v35 = vrot.slane %v1270_v52, 2  ;;  %v1287_v46 = vrot.slane %v1286_v30, 1  ;;  %v1305_v50 = vmax.f32 %v1303_v43, %v1304_v54 }
 0x37a   :  { %v1259_v25 = vrot.slane %v1258_v28, 1  ;;  %v1278_v45 = vrot.slane %v1277_v36, 2  ;;  %v1220_v51 = vcombine.high %v1164_v32, %v1164_v32  ;;  %v1227_v59 = vrot.slane %v1164_v32, %v4520_v57 }
 0x37b   :  { %v1265_v39 = vmax.f32 %v1263_v48, %v1264_v33  ;;  %v1272_v42 = vmax.f32 %v1270_v52, %v1271_v35  ;;  %v1293_v60 = vmax.f32 %v1291_v27, %v1292_v37  ;;  %v1163_v63 = vmax.f32 %v1159_v38, 0.0 }
 0x37c   :  { %v1279_v58 = vmax.f32 %v1277_v36, %v1278_v45  ;;  %v1260_v61 = vmax.f32 %v1258_v28, %v1259_v25  ;;  %v1234_v62 = vrot.slane %v1220_v51, %v4520_v57  ;;  %v1235_v4 = vcombine.high %v1227_v59, %v1227_v59 }
 0x37d   :  { %v1266_v55 = vrot.slane %v1265_v39, 1  ;;  %v1273_v56 = vrot.slane %v1272_v42, 1  ;;  %v1306_v5 = vrot.slane %v1305_v50, 2  ;;  %v1338_v7 = vsel %vm1253_vm5, %v1227_v59, -inf }
 0x37e   :  { %v1280_v3 = vrot.slane %v1279_v58, 1  ;;  %v1236_v6 = vcombine.high %v1234_v62, %v1234_v62  ;;  %v1203_v8 = vcombine.high %v1163_v63, %v1163_v63  ;;  %v1345_v11 = vsel %vm1253_vm5, %v1235_v4, -inf }
 0x37f   :  { %v1267_v0 = vmax.f32 %v1265_v39, %v1266_v55  ;;  %v1274_v53 = vmax.f32 %v1272_v42, %v1273_v56  ;;  %v1352_v41 = vsel %vm1253_vm5, %v1234_v62, -inf  ;;  %v1288_v12 = vmax.f32 %v1286_v30, %v1287_v46 }
 0x380   :  { %v1281_v9 = vmax.f32 %v1279_v58, %v1280_v3  ;;  %v1339_v14 = vrot.slane %v1338_v7, 4  ;;  %v1359_v15 = vsel %vm1253_vm5, %v1236_v6, -inf  ;;  %v1300_v16 = vmax.f32 %v1298_v31, %v1299_v47 }
 0x381   :  { %v1412_v10 = vsel %vm1411_vm6, %v1267_v0, %v1260_v61  ;;  %v1346_v18 = vrot.slane %v1345_v11, 4  ;;  %v1210_v19 = vrot.slane %v1163_v63, %v4520_v57  ;;  %v1307_v20 = vmax.f32 %v1305_v50, %v1306_v5 }
 0x382   :  { %v1414_v13 = vsel %vm1413_vm7, %v1274_v53, %v1412_v10  ;;  %v1353_v21 = vrot.slane %v1352_v41, 4  ;;  %v1217_v40 = vrot.slane %v1203_v8, %v4520_v57  ;;  %v1360_v43 = vrot.slane %v1359_v15, 4 }
 0x383   :  { %v1416_v17 = vsel %vm1415_vm8, %v1281_v9, %v1414_v13  ;;  %v1218_v49 = vcombine.high %v1210_v19, %v1210_v19  ;;  %v1310_v22 = vsel %vm1253_vm5, %v1210_v19, -inf  ;;  %v1294_v23 = vrot.slane %v1293_v60, 1 }
 0x384   :  { %v1418_v44 = vsel %vm1417_vm9, %v1288_v12, %v1416_v17  ;;  %v1340_v24 = vmax.f32 %v1338_v7, %v1339_v14  ;;  %v1219_v26 = vcombine.high %v1217_v40, %v1217_v40  ;;  %v1311_v27 = vrot.slane %v1310_v22, 4 }
 0x385   :  { %v1301_v28 = vrot.slane %v1300_v16, 1  ;;  %v1347_v48 = vmax.f32 %v1345_v11, %v1346_v18  ;;  %v1317_v52 = vsel %vm1253_vm5, %v1218_v49, -inf  ;;  %v1324_v29 = vsel %vm1253_vm5, %v1217_v40, -inf  ;;  %v1369_v49 = vld [vmem:[#allocation2 + $0x190] sm:$0xff] }
 0x386   :  { %v1308_v30 = vrot.slane %v1307_v20, 1  ;;  %v1354_v31 = vmax.f32 %v1352_v41, %v1353_v21  ;;  %v1312_v54 = vmax.f32 %v1310_v22, %v1311_v27  ;;  %v1318_v32 = vrot.slane %v1317_v52, 4  ;;  %v1370_v22 = vld [vmem:[#allocation2 + $0x198] sm:$0xff] }
 0x387   :  { %v1361_v33 = vmax.f32 %v1359_v15, %v1360_v43  ;;  %v1325_v35 = vrot.slane %v1324_v29, 4  ;;  %v1331_v36 = vsel %vm1253_vm5, %v1219_v26, -inf  ;;  %v1295_v37 = vmax.f32 %v1293_v60, %v1294_v23 }
 0x388   :  { %v1341_v25 = vrot.slane %v1340_v24, 2  ;;  %v1313_v38 = vrot.slane %v1312_v54, 2  ;;  %v1319_v39 = vmax.f32 %v1317_v52, %v1318_v32  ;;  %v1302_v42 = vmax.f32 %v1300_v16, %v1301_v28  ;;  %v1371_v52 = vld [vmem:[#allocation2 + $0x1a0] sm:$0xff] }
 0x389   :  { %v1348_v45 = vrot.slane %v1347_v48, 2  ;;  %v1326_v46 = vmax.f32 %v1324_v29, %v1325_v35  ;;  %v1332_v47 = vrot.slane %v1331_v36, 4  ;;  %v1309_v50 = vmax.f32 %v1307_v20, %v1308_v30  ;;  %v1372_v29 = vld [vmem:[#allocation2 + $0x1a8] sm:$0xff] }
 0x38a   :  { %v1355_v51 = vrot.slane %v1354_v31, 2  ;;  %v1314_v55 = vmax.f32 %v1312_v54, %v1313_v38  ;;  %v1320_v56 = vrot.slane %v1319_v39, 2  ;;  %v1362_v58 = vrot.slane %v1361_v33, 2 }
 0x38b   :  { %v1327_v59 = vrot.slane %v1326_v46, 2  ;;  %v1333_v61 = vmax.f32 %v1331_v36, %v1332_v47  ;;  %v1420_v62 = vsel %vm1419_vm10, %v1295_v37, %v1418_v44  ;;  %v1342_v63 = vmax.f32 %v1340_v24, %v1341_v25  ;;  %v4563_v36 = vpop.permute.xlu1 %1440  ;;  %v1385_v47 = vld [vmem:[#allocation2 + $0x200] sm:$0xff] }
 0x38c   :  { %v1315_v0 = vrot.slane %v1314_v55, 1  ;;  %v1321_v53 = vmax.f32 %v1319_v39, %v1320_v56  ;;  %v1422_v60 = vsel %vm1421_vm11, %v1302_v42, %v1420_v62  ;;  %v1349_v3 = vmax.f32 %v1347_v48, %v1348_v45  ;;  %v1373_v45 = vld [vmem:[#allocation2 + $0x1b0] sm:$0xff] }
 0x38d   :  { %v1328_v4 = vmax.f32 %v1326_v46, %v1327_v59  ;;  %v1334_v5 = vrot.slane %v1333_v61, 2  ;;  %v1424_v6 = vsel %vm1423_vm12, %v1309_v50, %v1422_v60  ;;  %v1356_v7 = vmax.f32 %v1354_v31, %v1355_v51  ;;  %v1386_v50 = vld [vmem:[#allocation2 + $0x208] sm:$0xff]  ;;  %v1387_v56 = vld [vmem:[#allocation2 + $0x210] sm:$0xff] }
 0x38e   :  { %v1322_v8 = vrot.slane %v1321_v53, 1  ;;  %3602 = vmatprep.mubr.msk.f32.mxu1 %vm493_vm4, %v1424_v6  ;;  %v1363_v9 = vmax.f32 %v1361_v33, %v1362_v58  ;;  %v1343_v41 = vrot.slane %v1342_v63, 1  ;;  %v1316_v12 = vmax.f32 %v1314_v55, %v1315_v0  ;;  %v4575_v55 = vpop.permute.xlu0 %1445  ;;  %v1388_v58 = vld [vmem:[#allocation2 + $0x218] sm:$0xff]  ;;  %v1389_v0 = vld [vmem:[#allocation2 + $0x220] sm:$0xff] }
 0x38f   :  { %v1329_v10 = vrot.slane %v1328_v4, 1  ;;  %v1335_v11 = vmax.f32 %v1333_v61, %v1334_v5  ;;  %v1350_v14 = vrot.slane %v1349_v3, 1  ;;  %v1357_v17 = vrot.slane %v1356_v7, 1  ;;  %v4577_v59 = vpop.permute.xlu1 %1455 }
 0x390   :  { %v1323_v13 = vmax.f32 %v1321_v53, %v1322_v8  ;;  %v1364_v19 = vrot.slane %v1363_v9, 1  ;;  %v1344_v40 = vmax.f32 %v1342_v63, %v1343_v41  ;;  %v3992_v48 = vpack.c.bf16 %v1370_v22, %v1369_v49  ;;  %v1390_v53 = vld [vmem:[#allocation2 + $0x228] sm:$0xff]  ;;  %v1733_v8 = vld [vmem:[#allocation2 + $0x2b0] sm:$0xff] }
 0x391   :  { %v1330_v15 = vmax.f32 %v1328_v4, %v1329_v10  ;;  %v1336_v16 = vrot.slane %v1335_v11, 1  ;;  %v1351_v44 = vmax.f32 %v1349_v3, %v1350_v14  ;;  %v1358_v23 = vmax.f32 %v1356_v7, %v1357_v17  ;;  %v1391_v3 = vld [vmem:[#allocation2 + $0x230] sm:$0xff]  ;;  %v1392_v4 = vld [vmem:[#allocation2 + $0x238] sm:$0xff]  ;;  %v1719_v41 = vld [vmem:[#allocation2 + $0x248] sm:$0xff] }
 0x392   :  { %v1425_v18 = vsel %vm1411_vm6, %v1323_v13, %v1316_v12  ;;  %v1365_v26 = vmax.f32 %v1363_v9, %v1364_v19  ;;  %v1434_v31 = vrot.slane %v1424_v6, 7  ;;  %v1450_v32 = vrot.slane %v1424_v6, 1  ;;  %v1734_v9 = vld [vmem:[#allocation2 + $0x2b8] sm:$0xff]  ;;  %v2023_v13 = vld [vmem:[#allocation2 + $0x340] sm:$0xff]  ;;  %v2024_v14 = vld [vmem:[#allocation2 + $0x348] sm:$0xff] }
 0x393   :  { %v1337_v20 = vmax.f32 %v1335_v11, %v1336_v16  ;;  %v1426_v21 = vsel %vm1413_vm7, %v1330_v15, %v1425_v18  ;;  %v3996_v35 = vpack.c.bf16 %v1372_v29, %v1371_v52  ;;  %v4004_v51 = vpack.c.bf16 %v1386_v50, %v1385_v47  ;;  %v4583_v6 = vpop.permute.xlu1 %1459  ;;  %v1718_v11 = vld [vmem:[#allocation2 + $0x240] sm:$0xff]  ;;  %v2025_v15 = vld [vmem:[#allocation2 + $0x350] sm:$0xff]  ;;  %v2026_v17 = vld [vmem:[#allocation2 + $0x358] sm:$0xff] }
 0x394   :  { %v4008_v62 = vpack.c.bf16 %v1388_v58, %v1387_v56  ;;  %v4012_v60 = vpack.c.bf16 %v1390_v53, %v1389_v0  ;;  %v4016_v5 = vpack.c.bf16 %v1392_v4, %v1391_v3  ;;  %v4032_v10 = vpack.c.bf16 %v1734_v9, %v1733_v8  ;;  %v2027_v19 = vld [vmem:[#allocation2 + $0x360] sm:$0xff]  ;;  %v1738_v50 = vld [vmem:[#allocation2 + $0x2d0] sm:$0xff] }
 0x395   :  { %v1427_v43 = vsel %vm1415_vm8, %v1337_v20, %v1426_v21  ;;  %v4036_v12 = vpack.c.bf16 %v1719_v41, %v1718_v11  ;;  %v4068_v16 = vpack.c.bf16 %v2024_v14, %v2023_v13  ;;  %v4072_v18 = vpack.c.bf16 %v2026_v17, %v2025_v15  ;;  %v2028_v20 = vld [vmem:[#allocation2 + $0x368] sm:$0xff]  ;;  %v1742_v53 = vld [vmem:[#allocation2 + $0x2f0] sm:$0xff]  ;;  %v2014_v9 = vld [vmem:[#allocation2 + $0x300] sm:$0xff] }
 0x396   :  { %v1428_v24 = vsel %vm1417_vm9, %v1344_v40, %v1427_v43  ;;  %4033 = vmatprep.subr.bf16.mxu0 %v4032_v10  ;;  %v4076_v21 = vpack.c.bf16 %v2028_v20, %v2027_v19  ;;  %v3164_v40 = vld [vmem:[%s4736_s3 + $0x3] ss:$0 sm:$0xff]  ;;  %v3172_v41 = vld [vmem:[%s4736_s3 + $0x4] ss:$0 sm:$0xff]  ;;  %v2017_v17 = vld [vmem:[#allocation2 + $0x318] sm:$0xff] }
 0x397   :  { %v1429_v27 = vsel %vm1419_vm10, %v1351_v44, %v1428_v24  ;;  %4035 = vmatpush3.bf16.msra.mxu0 %v4032_v10  ;;  %v1721_v24 = vld [vmem:[#allocation2 + $0x258] sm:$0xff]  ;;  %v2015_v10 = vld [vmem:[#allocation2 + $0x308] sm:$0xff] }
 0x398   :  { %v1430_v28 = vsel %vm1421_vm11, %v1358_v23, %v1429_v27  ;;  %4037 = vmatprep.subr.bf16.mxu0 %v4036_v12  ;;  %v1720_v23 = vld [vmem:[#allocation2 + $0x250] sm:$0xff]  ;;  %v4084_v11 = vpack.c.bf16 %v2015_v10, %v2014_v9  ;;  %v2432_v10 = vld [vmem:[#allocation2 + $0x460] sm:$0xff] }
 0x399   :  { %v1431_v30 = vsel %vm1423_vm12, %v1365_v26, %v1430_v28  ;;  %v4040_v52 = vpack.c.bf16 %v1721_v24, %v1720_v23 }
 0x39a   :  { %v1435_v54 = vrot.slane %v1431_v30, 7  ;;  %v1451_v33 = vrot.slane %v1431_v30, 1  ;;  %3603 = vmatmul.mubr.msk.f32.vlgmr.msra.gmra.mrb[4].mxu1 %vm493_vm4, %v1431_v30 }
 0x39b   :  { %3991 = vmatpush3.bf16.msra.mxu1 %v4513_v34  ;;  %v1374_v34 = vld [vmem:[#allocation2 + $0x1b8] sm:$0xff] }
 0x39c   :  { %v1437_v37 = vsel %vm63_vm2, %v1435_v54, %v1434_v31  ;;  %v1452_v25 = vsel %vm96_vm3, %v1450_v32, %v1451_v33  ;;  %v1453_v38 = vsel %vm96_vm3, %v1451_v33, %v1450_v32  ;;  %v1436_v39 = vsel %vm63_vm2, %v1434_v31, %v1435_v54  ;;  %3993 = vmatprep.subr.bf16.mxu1 %v3992_v48  ;;  %v1722_v31 = vld [vmem:[#allocation2 + $0x260] sm:$0xff]  ;;  %v1723_v54 = vld [vmem:[#allocation2 + $0x268] sm:$0xff] }
 0x39d   :  { %v1448_v42 = vmul.f32 %v4563_v36, %v1437_v37  ;;  %v4000_v46 = vpack.c.bf16 %v1374_v34, %v1373_v45  ;;  %v1449_v61 = vmul.f32 %v4575_v55, %v1436_v39  ;;  %v1462_v63 = vmul.f32 %v4577_v59, %v1452_v25  ;;  %v1724_v39 = vld [vmem:[#allocation2 + $0x270] sm:$0xff]  ;;  %v1736_v34 = vld [vmem:[#allocation2 + $0x2c0] sm:$0xff] }
 0x39e   :  { %v1463_v7 = vmul.f32 %v4583_v6, %v1453_v38  ;;  %v4044_v38 = vpack.c.bf16 %v1723_v54, %v1722_v31  ;;  %v2032_v31 = vld [vmem:[#allocation2 + $0x380] sm:$0xff]  ;;  %v2033_v54 = vld [vmem:[#allocation2 + $0x388] sm:$0xff] }
 0x39f   :  { %3995 = vmatpush3.bf16.msra.mxu1 %v3992_v48  ;;  %3621 = vmatprep.mubr.msk.f32.mxu1 %vm493_vm4, %v1448_v42  ;;  %v1725_v42 = vld [vmem:[#allocation2 + $0x278] sm:$0xff] }
 0x3a0   :  { %3997 = vmatprep.subr.bf16.mxu1 %v3996_v35  ;;  %v4048_v45 = vpack.c.bf16 %v1725_v42, %v1724_v39  ;;  %v2037_v39 = vld [vmem:[#allocation2 + $0x3a8] sm:$0xff] }
 0x3a3   :  { %3999 = vmatpush3.bf16.msra.mxu1 %v3996_v35 }
 0x3a4   :  { %4001 = vmatprep.subr.bf16.mxu1 %v4000_v46 }
 0x3a7   :  { %4003 = vmatpush3.bf16.msra.mxu1 %v4000_v46  ;;  %v1737_v46 = vld [vmem:[#allocation2 + $0x2c8] sm:$0xff] }
 0x3a8   :  { %4005 = vmatprep.subr.bf16.mxu1 %v4004_v51  ;;  %v4052_v47 = vpack.c.bf16 %v1737_v46, %v1736_v34  ;;  %v2039_v34 = vld [vmem:[#allocation2 + $0x3b8] sm:$0xff] }
 0x3aa   :  { %3622 = vmatmul.mubr.msk.f32.vlgmr.msra.gmra.mrb[4].mxu1 %vm493_vm4, %v1449_v61 }
 0x3ab   :  { %4007 = vmatpush3.bf16.msra.mxu1 %v4004_v51  ;;  %3640 = vmatprep.mubr.msk.f32.mxu1 %vm493_vm4, %v1462_v63  ;;  %v1739_v51 = vld [vmem:[#allocation2 + $0x2d8] sm:$0xff]  ;;  %v1741_v63 = vld [vmem:[#allocation2 + $0x2e8] sm:$0xff] }
 0x3ac   :  { %4009 = vmatprep.subr.bf16.mxu1 %v4008_v62  ;;  %v4056_v58 = vpack.c.bf16 %v1739_v51, %v1738_v50  ;;  %v4271_v51 = vmov 0.0|0.0  }
 0x3af   :  { %4011 = vmatpush3.bf16.msra.mxu1 %v4008_v62  ;;  %v1740_v62 = vld [vmem:[#allocation2 + $0x2e0] sm:$0xff] }
 0x3b0   :  { %4013 = vmatprep.subr.bf16.mxu1 %v4012_v60  ;;  %v4060_v0 = vpack.c.bf16 %v1741_v63, %v1740_v62  ;;  %v2428_v62 = vld [vmem:[#allocation2 + $0x440] sm:$0xff]  ;;  %v2429_v63 = vld [vmem:[#allocation2 + $0x448] sm:$0xff] }
 0x3b3   :  { %4015 = vmatpush3.bf16.msra.mxu1 %v4012_v60  ;;  %v1743_v60 = vld [vmem:[#allocation2 + $0x2f8] sm:$0xff] }
 0x3b4   :  { %4017 = vmatprep.subr.bf16.mxu1 %v4016_v5  ;;  %v4064_v3 = vpack.c.bf16 %v1743_v60, %v1742_v53  ;;  %v2424_v53 = vld [vmem:[#allocation2 + $0x428] sm:$0xff] }
 0x3b7   :  { %4019 = vmatpush3.bf16.msra.mxu1 %v4016_v5  ;;  %v2029_v5 = vld [vmem:[#allocation2 + $0x370] sm:$0xff] }
 0x3b8   :  { %4069 = vmatprep.subr.bf16.mxu1 %v4068_v16 }
 0x3ba   :  { %3641 = vmatmul.mubr.msk.f32.vlgmr.msra.gmra.mrb[4].mxu1 %vm493_vm4, %v1463_v7  ;;  %v2030_v7 = vld [vmem:[#allocation2 + $0x378] sm:$0xff] }
 0x3bb   :  { %4071 = vmatpush3.bf16.msra.mxu1 %v4068_v16  ;;  %v4080_v8 = vpack.c.bf16 %v2030_v7, %v2029_v5  ;;  %v2016_v16 = vld [vmem:[#allocation2 + $0x310] sm:$0xff] }
 0x3bc   :  { %4073 = vmatprep.subr.bf16.mxu1 %v4072_v18  ;;  %v2425_v7 = vld [vmem:[#allocation2 + $0x430] sm:$0xff] }
 0x3bf   :  { %4075 = vmatpush3.bf16.msra.mxu1 %v4072_v18 }
 0x3c0   :  { %4077 = vmatprep.subr.bf16.mxu1 %v4076_v21 }
 0x3c3   :  { %4079 = vmatpush3.bf16.msra.mxu1 %v4076_v21 }
 0x3c4   :  { %4081 = vmatprep.subr.bf16.mxu1 %v4080_v8 }
 0x3c7   :  { %4083 = vmatpush3.bf16.msra.mxu1 %v4080_v8  ;;  %v2426_v8 = vld [vmem:[#allocation2 + $0x438] sm:$0xff] }
 0x3c8   :  { %4085 = vmatprep.subr.bf16.mxu1 %v4084_v11  ;;  %v4126_v9 = vpack.c.bf16 %v2426_v8, %v2425_v7 }
 0x48d   :  { %v3642_v44 = vpop.f32.mrb[4].mxu1 }
 0x48e   :  { %v1714_v43 = vadd.f32 %v3642_v44, %v3164_v40  ;;  %v1696_v49 = vpop.f32.mrb[5].mxu1 }
 0x48f   :  { %v1713_v22 = vadd.f32 %v3164_v40, %v1696_v49  ;;  %v4088_v40 = vpack.c.bf16 %v2017_v17, %v2016_v16  ;;  %v2018_v49 = vld [vmem:[#allocation2 + $0x320] sm:$0xff] }
 0x490   :  { %v1716_v26 = vmax.f32 %v1714_v43, 0.0  ;;  %v3180_v16 = vld [vmem:[%s4736_s3 + $0x5] ss:$0 sm:$0xff] }
 0x491   :  { %v1715_v27 = vmax.f32 %v1713_v22, 0.0  ;;  %v2019_v22 = vld [vmem:[#allocation2 + $0x328] sm:$0xff] }
 0x492   :  { %v1747_v28 = vrot.slane %v1716_v26, 7  ;;  %v1753_v48 = vrot.slane %v1716_v26, 1 }
 0x493   :  { %v1746_v29 = vrot.slane %v1715_v27, 7  ;;  %v1752_v30 = vrot.slane %v1715_v27, 1  ;;  %3659 = vmatprep.mubr.msk.f32.mxu0 %vm493_vm4, %v1715_v27 }
 0x494   :  { %3660 = vmatmul.mubr.msk.f32.vlgmr.msra.gmra.mrb[8].mxu0 %vm493_vm4, %v1716_v26 }
 0x495   :  { %v1748_v32 = vsel %vm63_vm2, %v1746_v29, %v1747_v28  ;;  %v1755_v33 = vsel %vm96_vm3, %v1753_v48, %v1752_v30  ;;  %4039 = vmatpush3.bf16.msra.mxu0 %v4036_v12  ;;  %v1749_v35 = vsel %vm63_vm2, %v1747_v28, %v1746_v29  ;;  %v1754_v37 = vsel %vm96_vm3, %v1752_v30, %v1753_v48  ;;  %v2021_v29 = vld [vmem:[#allocation2 + $0x338] sm:$0xff] }
 0x496   :  { %4041 = vmatprep.subr.bf16.mxu0 %v4040_v52  ;;  %v1750_v25 = vmul.f32 %v1749_v35, %v4563_v36  ;;  %v1751_v56 = vmul.f32 %v1748_v32, %v4575_v55  ;;  %v1756_v61 = vmul.f32 %v1754_v37, %v4577_v59  ;;  %v1757_v4 = vmul.f32 %v1755_v33, %v4583_v6  ;;  %v2034_v33 = vld [vmem:[#allocation2 + $0x390] sm:$0xff]  ;;  %v2035_v35 = vld [vmem:[#allocation2 + $0x398] sm:$0xff] }
 0x497   :  { %v4092_v48 = vpack.c.bf16 %v2019_v22, %v2018_v49  ;;  %v4100_v32 = vpack.c.bf16 %v2033_v54, %v2032_v31 }
 0x498   :  { %3678 = vmatprep.mubr.msk.f32.mxu0 %vm493_vm4, %v1750_v25 }
 0x499   :  { %4043 = vmatpush3.bf16.msra.mxu0 %v4040_v52  ;;  %v2020_v52 = vld [vmem:[#allocation2 + $0x330] sm:$0xff] }
 0x49a   :  { %4045 = vmatprep.subr.bf16.mxu0 %v4044_v38  ;;  %v4096_v30 = vpack.c.bf16 %v2021_v29, %v2020_v52 }
 0x49d   :  { %4047 = vmatpush3.bf16.msra.mxu0 %v4044_v38  ;;  %v2036_v38 = vld [vmem:[#allocation2 + $0x3a0] sm:$0xff] }
 0x49e   :  { %4049 = vmatprep.subr.bf16.mxu0 %v4048_v45  ;;  %v4108_v42 = vpack.c.bf16 %v2037_v39, %v2036_v38 }
 0x4a1   :  { %4051 = vmatpush3.bf16.msra.mxu0 %v4048_v45  ;;  %v2038_v45 = vld [vmem:[#allocation2 + $0x3b0] sm:$0xff] }
 0x4a2   :  { %4053 = vmatprep.subr.bf16.mxu0 %v4052_v47  ;;  %v4112_v46 = vpack.c.bf16 %v2039_v34, %v2038_v45 }
 0x4a4   :  { %3679 = vmatmul.mubr.msk.f32.vlgmr.msra.gmra.mrb[8].mxu0 %vm493_vm4, %v1751_v56  ;;  %v2421_v56 = vld [vmem:[#allocation2 + $0x410] sm:$0xff] }
 0x4a5   :  { %4055 = vmatpush3.bf16.msra.mxu0 %v4052_v47  ;;  %3697 = vmatprep.mubr.msk.f32.mxu0 %vm493_vm4, %v1756_v61  ;;  %v2420_v47 = vld [vmem:[#allocation2 + $0x408] sm:$0xff] }
 0x4a6   :  { %4057 = vmatprep.subr.bf16.mxu0 %v4056_v58 }
 0x4a9   :  { %4059 = vmatpush3.bf16.msra.mxu0 %v4056_v58  ;;  %v2422_v58 = vld [vmem:[#allocation2 + $0x418] sm:$0xff] }
 0x4aa   :  { %4061 = vmatprep.subr.bf16.mxu0 %v4060_v0  ;;  %v4120_v61 = vpack.c.bf16 %v2422_v58, %v2421_v56 }
 0x4ad   :  { %4063 = vmatpush3.bf16.msra.mxu0 %v4060_v0  ;;  %v4141_v0 = vpack.c.bf16 %v2429_v63, %v2428_v62 }
 0x4ae   :  { %4065 = vmatprep.subr.bf16.mxu0 %v4064_v3 }
 0x4b1   :  { %4067 = vmatpush3.bf16.msra.mxu0 %v4064_v3  ;;  %v2430_v3 = vld [vmem:[#allocation2 + $0x450] sm:$0xff] }
 0x4b2   :  { %4116 = vmatprep.subr.bf16.mxu0 %v4271_v51 }
 0x4b4   :  { %3698 = vmatmul.mubr.msk.f32.vlgmr.msra.gmra.mrb[8].mxu0 %vm493_vm4, %v1757_v4  ;;  %v2431_v4 = vld [vmem:[#allocation2 + $0x458] sm:$0xff] }
 0x4b5   :  { %v4144_v5 = vpack.c.bf16 %v2431_v4, %v2430_v3 }
 0x587   :  { %v3699_v12 = vpop.f32.mrb[8].mxu0 }
 0x588   :  { %v2010_v13 = vadd.f32 %v3699_v12, %v3172_v41  ;;  %v1992_v14 = vpop.f32.mrb[9].mxu0  ;;  %v4273_v12 = vmov 0.0  }
 0x589   :  { %v2009_v15 = vadd.f32 %v3172_v41, %v1992_v14  ;;  %3773 = vmatprep.mubr.msk.f32.mxu0 %vm4272_vm13, %v4273_v12  ;;  %v2435_v14 = vld [vmem:[#allocation2 + $0x478] sm:$0xff] }
 0x58a   :  { %v2012_v18 = vmax.f32 %v2010_v13, 0.0  ;;  %v2434_v13 = vld [vmem:[#allocation2 + $0x470] sm:$0xff] }
 0x58b   :  { %v2011_v19 = vmax.f32 %v2009_v15, 0.0  ;;  %v4150_v15 = vpack.c.bf16 %v2435_v14, %v2434_v13 }
 0x58c   :  { %v2043_v20 = vrot.slane %v2012_v18, 7  ;;  %v2049_v21 = vrot.slane %v2012_v18, 1 }
 0x58d   :  { %v2042_v44 = vrot.slane %v2011_v19, 7  ;;  %v2048_v43 = vrot.slane %v2011_v19, 1  ;;  %3716 = vmatprep.mubr.msk.f32.mxu1 %vm493_vm4, %v2011_v19 }
 0x58e   :  { %3717 = vmatmul.mubr.msk.f32.vlgmr.msra.gmra.mrb[6].mxu1 %vm493_vm4, %v2012_v18 }
 0x58f   :  { %v2044_v23 = vsel %vm63_vm2, %v2042_v44, %v2043_v20  ;;  %v2051_v24 = vsel %vm96_vm3, %v2049_v21, %v2048_v43  ;;  %4087 = vmatpush3.bf16.msra.mxu1 %v4084_v11  ;;  %v2045_v26 = vsel %vm63_vm2, %v2043_v20, %v2042_v44  ;;  %v2050_v27 = vsel %vm96_vm3, %v2048_v43, %v2049_v21  ;;  %v2433_v11 = vld [vmem:[#allocation2 + $0x468] sm:$0xff] }
 0x590   :  { %4089 = vmatprep.subr.bf16.mxu1 %v4088_v40  ;;  %v2046_v28 = vmul.f32 %v2045_v26, %v4563_v36  ;;  %v2047_v37 = vmul.f32 %v2044_v23, %v4575_v55  ;;  %v4104_v36 = vpack.c.bf16 %v2035_v35, %v2034_v33  ;;  %v2052_v25 = vmul.f32 %v2050_v27, %v4577_v59  ;;  %v2419_v59 = vld [vmem:[#allocation2 + $0x400] sm:$0xff] }
 0x591   :  { %v2053_v55 = vmul.f32 %v2051_v24, %v4583_v6  ;;  %v4117_v50 = vpack.c.bf16 %v2420_v47, %v2419_v59  ;;  %v2423_v6 = vld [vmem:[#allocation2 + $0x420] sm:$0xff]  ;;  %v4147_v41 = vpack.c.bf16 %v2433_v11, %v2432_v10 }
 0x592   :  { %3735 = vmatprep.mubr.msk.f32.mxu1 %vm493_vm4, %v2046_v28  ;;  %v4123_v60 = vpack.c.bf16 %v2424_v53, %v2423_v6 }
 0x593   :  { %4091 = vmatpush3.bf16.msra.mxu1 %v4088_v40  ;;  %4118 = vmatpush3.bf16.msra.mxu0 %v4117_v50 }
 0x594   :  { %4093 = vmatprep.subr.bf16.mxu1 %v4092_v48  ;;  %4119 = vmatprep.subr.bf16.mxu0 %v4271_v51 }
 0x597   :  { %4095 = vmatpush3.bf16.msra.mxu1 %v4092_v48  ;;  %4121 = vmatpush3.bf16.msra.mxu0 %v4120_v61 }
 0x598   :  { %4097 = vmatprep.subr.bf16.mxu1 %v4096_v30  ;;  %4122 = vmatprep.subr.bf16.mxu0 %v4271_v51 }
 0x59b   :  { %4099 = vmatpush3.bf16.msra.mxu1 %v4096_v30  ;;  %4124 = vmatpush3.bf16.msra.mxu0 %v4123_v60 }
 0x59c   :  { %4101 = vmatprep.subr.bf16.mxu1 %v4100_v32  ;;  %4125 = vmatprep.subr.bf16.mxu0 %v4271_v51 }
 0x59e   :  { %3736 = vmatmul.mubr.msk.f32.vlgmr.msra.gmra.mrb[6].mxu1 %vm493_vm4, %v2047_v37 }
 0x59f   :  { %4103 = vmatpush3.bf16.msra.mxu1 %v4100_v32  ;;  %3754 = vmatprep.mubr.msk.f32.mxu1 %vm493_vm4, %v2052_v25 }
 0x5a0   :  { %4105 = vmatprep.subr.bf16.mxu1 %v4104_v36  ;;  %4127 = vmatpush3.bf16.msra.mxu0 %v4126_v9 }
 0x5a1   :  { %4128 = vmatprep.subr.bf16.mxu0 %v4271_v51 }
 0x5a3   :  { %4107 = vmatpush3.bf16.msra.mxu1 %v4104_v36 }
 0x5a4   :  { %4109 = vmatprep.subr.bf16.mxu1 %v4108_v42 }
 0x5a7   :  { %4111 = vmatpush3.bf16.msra.mxu1 %v4108_v42 }
 0x5a8   :  { %4113 = vmatprep.subr.bf16.mxu1 %v4112_v46 }
 0x5ab   :  { %4115 = vmatpush3.bf16.msra.mxu1 %v4112_v46 }
 0x5ac   :  { %4140 = vmatprep.subr.bf16.mxu1 %v4271_v51 }
 0x5ae   :  { %3755 = vmatmul.mubr.msk.f32.vlgmr.msra.gmra.mrb[6].mxu1 %vm493_vm4, %v2053_v55 }
 0x5af   :  { %4142 = vmatpush3.bf16.msra.mxu1 %v4141_v0  ;;  %3811 = vmatprep.mubr.msk.f32.mxu1 %vm4272_vm13, %v4273_v12 }
 0x5b0   :  { %4143 = vmatprep.subr.bf16.mxu1 %v4271_v51 }
 0x5b3   :  { %4145 = vmatpush3.bf16.msra.mxu1 %v4144_v5 }
 0x5b4   :  { %4146 = vmatprep.subr.bf16.mxu1 %v4271_v51 }
 0x5b7   :  { %4148 = vmatpush3.bf16.msra.mxu1 %v4147_v41 }
 0x5b8   :  { %4149 = vmatprep.subr.bf16.mxu1 %v4271_v51 }
 0x5bb   :  { %4151 = vmatpush3.bf16.msra.mxu1 %v4150_v15 }
 0x5bc   :  { %4164 = vmatprep.subr.bf16.mxu1 %v4271_v51 }
 0x681   :  { %v3756_v17 = vpop.f32.mrb[6].mxu1 }
 0x682   :  { %v2306_v18 = vadd.f32 %v3756_v17, %v3180_v16  ;;  %v2288_v19 = vpop.f32.mrb[7].mxu1 }
 0x683   :  { %v2305_v20 = vadd.f32 %v3180_v16, %v2288_v19 }
 0x684   :  { %v2308_v21 = vmax.f32 %v2306_v18, 0.0 }
 0x685   :  { %v2307_v40 = vmax.f32 %v2305_v20, 0.0 }
 0x686   :  { %v2328_v44 = vcombine.high %v2308_v21, %v2308_v21  ;;  %v2335_v43 = vrot.slane %v2308_v21, %v4520_v57 }
 0x687   :  { %v2311_v49 = vcombine.high %v2307_v40, %v2307_v40  ;;  %v2318_v22 = vrot.slane %v2307_v40, %v4520_v57 }
 0x688   :  { %v2342_v23 = vrot.slane %v2328_v44, %v4520_v57  ;;  %v2343_v24 = vcombine.high %v2335_v43, %v2335_v43  ;;  %v2381_v26 = vsel %vm1253_vm5, %v2335_v43, -inf }
 0x689   :  { %v2382_v27 = vrot.slane %v2381_v26, 4  ;;  %v2325_v28 = vrot.slane %v2311_v49, %v4520_v57  ;;  %v2326_v48 = vcombine.high %v2318_v22, %v2318_v22  ;;  %v2353_v52 = vsel %vm1253_vm5, %v2318_v22, -inf }
 0x68a   :  { %v2344_v29 = vcombine.high %v2342_v23, %v2342_v23  ;;  %v2388_v30 = vsel %vm1253_vm5, %v2343_v24, -inf  ;;  %v2395_v31 = vsel %vm1253_vm5, %v2342_v23, -inf  ;;  %v2354_v54 = vrot.slane %v2353_v52, 4 }
 0x68b   :  { %v2383_v32 = vmax.f32 %v2381_v26, %v2382_v27  ;;  %v2389_v33 = vrot.slane %v2388_v30, 4  ;;  %v2396_v35 = vrot.slane %v2395_v31, 4  ;;  %v2327_v37 = vcombine.high %v2325_v28, %v2325_v28  ;;  %v2410_v26 = vld [vmem:[#allocation2 + $0x3c0] sm:$0xff]  ;;  %v2411_v27 = vld [vmem:[#allocation2 + $0x3c8] sm:$0xff] }
 0x68c   :  { %v2402_v36 = vsel %vm1253_vm5, %v2344_v29, -inf  ;;  %v2355_v25 = vmax.f32 %v2353_v52, %v2354_v54  ;;  %v2360_v38 = vsel %vm1253_vm5, %v2326_v48, -inf  ;;  %v2367_v39 = vsel %vm1253_vm5, %v2325_v28, -inf }
 0x68d   :  { %v2390_v42 = vmax.f32 %v2388_v30, %v2389_v33  ;;  %v2397_v45 = vmax.f32 %v2395_v31, %v2396_v35  ;;  %v2403_v34 = vrot.slane %v2402_v36, 4  ;;  %v2361_v55 = vrot.slane %v2360_v38, 4  ;;  %v2412_v33 = vld [vmem:[#allocation2 + $0x3d0] sm:$0xff]  ;;  %v2413_v35 = vld [vmem:[#allocation2 + $0x3d8] sm:$0xff] }
 0x68e   :  { %v2356_v46 = vrot.slane %v2355_v25, 2  ;;  %v2368_v59 = vrot.slane %v2367_v39, 4  ;;  %v2374_v47 = vsel %vm1253_vm5, %v2327_v37, -inf  ;;  %v2384_v50 = vrot.slane %v2383_v32, 2 }
 0x68f   :  { %v2391_v56 = vrot.slane %v2390_v42, 2  ;;  %v2404_v58 = vmax.f32 %v2402_v36, %v2403_v34  ;;  %v2362_v62 = vmax.f32 %v2360_v38, %v2361_v55  ;;  %v2375_v0 = vrot.slane %v2374_v47, 4  ;;  %v2417_v55 = vld [vmem:[#allocation2 + $0x3f8] sm:$0xff] }
 0x690   :  { %v2357_v61 = vmax.f32 %v2355_v25, %v2356_v46  ;;  %v2369_v63 = vmax.f32 %v2367_v39, %v2368_v59  ;;  %v2398_v6 = vrot.slane %v2397_v45, 2  ;;  %v2385_v5 = vmax.f32 %v2383_v32, %v2384_v50  ;;  %v4666_v25 = vpop.permute.xlu1 %2463  ;;  %v2416_v46 = vld [vmem:[#allocation2 + $0x3f0] sm:$0xff]  ;;  %v4677_v50 = vpop.permute.xlu0 %2457 }
 0x691   :  { %v2405_v53 = vrot.slane %v2404_v58, 2  ;;  %v2363_v60 = vrot.slane %v2362_v62, 2  ;;  %v2376_v4 = vmax.f32 %v2374_v47, %v2375_v0  ;;  %v2392_v7 = vmax.f32 %v2390_v42, %v2391_v56  ;;  %v2414_v42 = vld [vmem:[#allocation2 + $0x3e0] sm:$0xff]  ;;  %v2707_v0 = vld [vmem:[#allocation2 + $0x4d8] sm:$0xff] }
 0x692   :  { %v2370_v3 = vrot.slane %v2369_v63, 2  ;;  %v2358_v8 = vrot.slane %v2357_v61, 1  ;;  %v2399_v41 = vmax.f32 %v2397_v45, %v2398_v6  ;;  %v2386_v17 = vrot.slane %v2385_v5, 1  ;;  %v2415_v45 = vld [vmem:[#allocation2 + $0x3e8] sm:$0xff]  ;;  %v2695_v6 = vld [vmem:[#allocation2 + $0x480] sm:$0xff] }
 0x693   :  { %v2364_v9 = vmax.f32 %v2362_v62, %v2363_v60  ;;  %v2377_v11 = vrot.slane %v2376_v4, 2  ;;  %v2406_v13 = vmax.f32 %v2404_v58, %v2405_v53  ;;  %v2393_v18 = vrot.slane %v2392_v7, 1  ;;  %v2704_v58 = vld [vmem:[#allocation2 + $0x4c0] sm:$0xff]  ;;  %v2706_v62 = vld [vmem:[#allocation2 + $0x4d0] sm:$0xff]  ;;  %v2696_v53 = vld [vmem:[#allocation2 + $0x488] sm:$0xff] }
 0x694   :  { %v2371_v10 = vmax.f32 %v2369_v63, %v2370_v3  ;;  %v2359_v19 = vmax.f32 %v2357_v61, %v2358_v8  ;;  %v2400_v44 = vrot.slane %v2399_v41, 1  ;;  %v2387_v23 = vmax.f32 %v2385_v5, %v2386_v17  ;;  %v2705_v61 = vld [vmem:[#allocation2 + $0x4c8] sm:$0xff]  ;;  %v2697_v8 = vld [vmem:[#allocation2 + $0x490] sm:$0xff] }
 0x695   :  { %v2365_v14 = vrot.slane %v2364_v9, 1  ;;  %v2378_v16 = vmax.f32 %v2376_v4, %v2377_v11  ;;  %v2407_v22 = vrot.slane %v2406_v13, 1  ;;  %v2394_v28 = vmax.f32 %v2392_v7, %v2393_v18  ;;  %v2708_v4 = vld [vmem:[#allocation2 + $0x4e0] sm:$0xff]  ;;  %v2709_v5 = vld [vmem:[#allocation2 + $0x4e8] sm:$0xff]  ;;  %v2710_v11 = vld [vmem:[#allocation2 + $0x4f0] sm:$0xff] }
 0x696   :  { %v2372_v15 = vrot.slane %v2371_v10, 1  ;;  %v2401_v52 = vmax.f32 %v2399_v41, %v2400_v44  ;;  %v4129_v54 = vpack.c.bf16 %v2411_v27, %v2410_v26  ;;  %v4132_v38 = vpack.c.bf16 %v2413_v35, %v2412_v33  ;;  %v2711_v41 = vld [vmem:[#allocation2 + $0x4f8] sm:$0xff]  ;;  %v2701_v17 = vld [vmem:[#allocation2 + $0x4b0] sm:$0xff]  ;;  %v2713_v26 = vld [vmem:[#allocation2 + $0x500] sm:$0xff] }
 0x697   :  { %v2366_v20 = vmax.f32 %v2364_v9, %v2365_v14  ;;  %v2379_v40 = vrot.slane %v2378_v16, 1  ;;  %v2408_v30 = vmax.f32 %v2406_v13, %v2407_v22  ;;  %v4135_v34 = vpack.c.bf16 %v2415_v45, %v2414_v42  ;;  %v2698_v9 = vld [vmem:[#allocation2 + $0x498] sm:$0xff]  ;;  %v2699_v14 = vld [vmem:[#allocation2 + $0x4a0] sm:$0xff]  ;;  %v2714_v27 = vld [vmem:[#allocation2 + $0x508] sm:$0xff] }
 0x698   :  { %v2373_v21 = vmax.f32 %v2371_v10, %v2372_v15  ;;  %v4138_v59 = vpack.c.bf16 %v2417_v55, %v2416_v46  ;;  %v4153_v63 = vpack.c.bf16 %v2705_v61, %v2704_v58  ;;  %v4165_v60 = vpack.c.bf16 %v2696_v53, %v2695_v6  ;;  %v2700_v15 = vld [vmem:[#allocation2 + $0x4a8] sm:$0xff]  ;;  %v2702_v18 = vld [vmem:[#allocation2 + $0x4b8] sm:$0xff]  ;;  %v2717_v33 = vld [vmem:[#allocation2 + $0x520] sm:$0xff] }
 0x699   :  { %v2380_v43 = vmax.f32 %v2378_v16, %v2379_v40  ;;  %v2446_v49 = vsel %vm1411_vm6, %v2366_v20, %v2359_v19  ;;  %v4156_v3 = vpack.c.bf16 %v2707_v0, %v2706_v62  ;;  %v4159_v7 = vpack.c.bf16 %v2709_v5, %v2708_v4  ;;  %v2718_v35 = vld [vmem:[#allocation2 + $0x528] sm:$0xff] }
 0x69a   :  { %v2447_v24 = vsel %vm1413_vm7, %v2373_v21, %v2446_v49  ;;  %v4168_v10 = vpack.c.bf16 %v2698_v9, %v2697_v8  ;;  %v4162_v13 = vpack.c.bf16 %v2711_v41, %v2710_v11  ;;  %v4171_v16 = vpack.c.bf16 %v2700_v15, %v2699_v14 }
 0x69b   :  { %v2448_v48 = vsel %vm1415_vm8, %v2380_v43, %v2447_v24  ;;  %v4174_v19 = vpack.c.bf16 %v2702_v18, %v2701_v17 }
 0x69c   :  { %v2449_v29 = vsel %vm1417_vm9, %v2387_v23, %v2448_v48  ;;  %v3185_v23 = vld [vmem:[%s4736_s3 + $0x6] ss:$0 sm:$0xff]  ;;  %v4177_v48 = vpack.c.bf16 %v2714_v27, %v2713_v26 }
 0x69d   :  { %v2450_v31 = vsel %vm1419_vm10, %v2394_v28, %v2449_v29  ;;  %v2715_v29 = vld [vmem:[#allocation2 + $0x510] sm:$0xff] }
 0x69e   :  { %v2451_v32 = vsel %vm1421_vm11, %v2401_v52, %v2450_v31 }
 0x69f   :  { %v2452_v37 = vsel %vm1423_vm12, %v2408_v30, %v2451_v32  ;;  %v2716_v30 = vld [vmem:[#allocation2 + $0x518] sm:$0xff] }
 0x6a0   :  { %v2461_v36 = vrot.slane %v2452_v37, 1  ;;  %3774 = vmatmul.mubr.msk.f32.vlgmr.msra.gmra.mrb[10].mxu0 %vm493_vm4, %v2452_v37  ;;  %v2454_v47 = vrot.slane %v2452_v37, 7  ;;  %v4183_v37 = vpack.c.bf16 %v2718_v35, %v2717_v33 }
 0x6a1   :  { %4130 = vmatpush3.bf16.msra.mxu0 %v4129_v54  ;;  %3792 = vmatprep.mubr.msk.f32.mxu0 %vm4272_vm13, %v4273_v12  ;;  %v4180_v54 = vpack.c.bf16 %v2716_v30, %v2715_v29 }
 0x6a2   :  { %v2466_v39 = vmul.f32 %v4666_v25, %v2461_v36  ;;  %4131 = vmatprep.subr.bf16.mxu0 %v4271_v51  ;;  %v2460_v56 = vmul.f32 %v4677_v50, %v2454_v47  ;;  %v2719_v36 = vld [vmem:[#allocation2 + $0x530] sm:$0xff] }
 0x6a4   :  { %3812 = vmatmul.mubr.msk.f32.vlgmr.msra.gmra.mrb[8].mxu1 %vm493_vm4, %v2466_v39 }
 0x6a5   :  { %4133 = vmatpush3.bf16.msra.mxu0 %v4132_v38  ;;  %3849 = vmatprep.mubr.msk.f32.mxu1 %vm4272_vm13, %v4273_v12  ;;  %v2720_v38 = vld [vmem:[#allocation2 + $0x538] sm:$0xff] }
 0x6a6   :  { %4134 = vmatprep.subr.bf16.mxu0 %v4271_v51  ;;  %4166 = vmatpush3.bf16.msra.mxu1 %v4165_v60  ;;  %v4186_v39 = vpack.c.bf16 %v2720_v38, %v2719_v36 }
 0x6a7   :  { %4167 = vmatprep.subr.bf16.mxu1 %v4271_v51 }
 0x6a9   :  { %4136 = vmatpush3.bf16.msra.mxu0 %v4135_v34  ;;  %v3007_v34 = vand.u32 127, %v61_v1 }
 0x6aa   :  { %4137 = vmatprep.subr.bf16.mxu0 %v4271_v51  ;;  %4169 = vmatpush3.bf16.msra.mxu1 %v4168_v10 }
 0x6ab   :  { %4170 = vmatprep.subr.bf16.mxu1 %v4271_v51  ;;  %vm3008_vm14 = vcmp.eq.s32.totalorder %v4327_v2, %v3007_v34 }
 0x6ac   :  { %v3191_v46 = vsel %vm3008_vm14, 1.0, %v4273_v12 }
 0x6ad   :  { %4139 = vmatpush3.bf16.msra.mxu0 %v4138_v59 }
 0x6ae   :  { %4152 = vmatprep.subr.bf16.mxu0 %v4271_v51  ;;  %4172 = vmatpush3.bf16.msra.mxu1 %v4171_v16 }
 0x6af   :  { %4173 = vmatprep.subr.bf16.mxu1 %v4271_v51 }
 0x6b0   :  { %3793 = vmatmul.mubr.msk.f32.vlgmr.msra.gmra.mrb[12].mxu0 %vm493_vm4, %v2460_v56 }
 0x6b1   :  { %3830 = vmatprep.mubr.msk.f32.mxu0 %vm4272_vm13, %v4273_v12  ;;  %4154 = vmatpush3.bf16.msra.mxu0 %v4153_v63 }
 0x6b2   :  { %4155 = vmatprep.subr.bf16.mxu0 %v4271_v51  ;;  %4175 = vmatpush3.bf16.msra.mxu1 %v4174_v19 }
 0x6b5   :  { %4157 = vmatpush3.bf16.msra.mxu0 %v4156_v3 }
 0x6b6   :  { %4158 = vmatprep.subr.bf16.mxu0 %v4271_v51 }
 0x6b9   :  { %4160 = vmatpush3.bf16.msra.mxu0 %v4159_v7 }
 0x6ba   :  { %4161 = vmatprep.subr.bf16.mxu0 %v4271_v51 }
 0x6bd   :  { %4163 = vmatpush3.bf16.msra.mxu0 %v4162_v13 }
 0x6be   :  { %4176 = vmatprep.subr.bf16.mxu0 %v4271_v51 }
 0x773   :  { %v2535_v20 = vpop.f32.mrb[10].mxu0 }
 0x774   :  { %v3775_v21 = vpop.f32.mrb[11].mxu0 }
 0x777   :  { %v2681_v40 = vpop.f32.mrb[8].mxu1 }
 0x778   :  { %v3813_v44 = vpop.f32.mrb[9].mxu1 }
 0x783   :  { %v2608_v43 = vpop.f32.mrb[12].mxu0 }
 0x784   :  { %v2609_v49 = vadd.f32 %v2608_v43, %v2535_v20  ;;  %v3794_v22 = vpop.f32.mrb[13].mxu0 }
 0x785   :  { %v3005_v22 = vadd.s32 8, %v4327_v2 }
 0x786   :  { %v2685_v24 = vadd.f32 %v2681_v40, %v2609_v49 }
 0x787   :  { %vm3009_vm15 = vcmp.eq.s32.totalorder %v3005_v22, %v3007_v34 }
 0x788   :  { %v2692_v28 = vadd.f32 %v3185_v23, %v2685_v24  ;;  %v3192_v30 = vsel %vm3009_vm15, 1.0, %v4273_v12 }
 0x78a   :  { %v2693_v52 = vmax.f32 %v2692_v28, 0.0 }
 0x78c   :  { %v2723_v31 = vrot.slane %v2693_v52, 7  ;;  %3831 = vmatmul.mubr.msk.f32.vlgmr.msra.gmra.mrb[14].mxu0 %vm493_vm4, %v2693_v52  ;;  %v2725_v42 = vrot.slane %v2693_v52, 1 }
 0x78d   :  { %4178 = vmatpush3.bf16.msra.mxu0 %v4177_v48  ;;  %3868 = vmatprep.mubr.msk.f32.mxu0 %vm4272_vm13, %v4273_v12 }
 0x78e   :  { %v2724_v32 = vmul.f32 %v2723_v31, %v4677_v50  ;;  %4179 = vmatprep.subr.bf16.mxu0 %v4271_v51  ;;  %v2726_v45 = vmul.f32 %v2725_v42, %v4666_v25 }
 0x790   :  { %3850 = vmatmul.mubr.msk.f32.vlgmr.msra.gmra.mrb[10].mxu1 %vm493_vm4, %v2724_v32 }
 0x791   :  { %4181 = vmatpush3.bf16.msra.mxu0 %v4180_v54  ;;  %3873 = vmatprep.mubr.msk.f32.mxu1 %vm493_vm4, %v3191_v46 }
 0x792   :  { %4182 = vmatprep.subr.bf16.mxu0 %v4271_v51 }
 0x795   :  { %4184 = vmatpush3.bf16.msra.mxu0 %v4183_v37 }
 0x796   :  { %4185 = vmatprep.subr.bf16.mxu0 %v4271_v51  ;;  %v3190_v51 = vld [vmem:[%s4736_s3 + $0x7] ss:$0 sm:$0xff] }
 0x799   :  { %4187 = vmatpush3.bf16.msra.mxu0 %v4186_v39 }
 0x79c   :  { %3869 = vmatmul.mubr.msk.f32.vlgmr.msra.gmra.mrb[16].mxu0 %vm493_vm4, %v2726_v45 }
 0x85f   :  { %v2796_v55 = vpop.f32.mrb[14].mxu0 }
 0x860   :  { %v3832_v59 = vpop.f32.mrb[15].mxu0 }
 0x863   :  { %v2869_v47 = vpop.f32.mrb[10].mxu1 }
 0x864   :  { %v2870_v50 = vadd.f32 %v2869_v47, %v2796_v55  ;;  %v3851_v56 = vpop.f32.mrb[11].mxu1 }
 0x86f   :  { %v2942_v25 = vpop.f32.mrb[16].mxu0 }
 0x870   :  { %v2946_v58 = vadd.f32 %v2942_v25, %v2870_v50  ;;  %v3870_v61 = vpop.f32.mrb[17].mxu0 }
 0x872   :  { %v2953_v62 = vadd.f32 %v3190_v51, %v2946_v58 }
 0x874   :  { %v2954_v1 = vmax.f32 %v2953_v62, 0.0 }
 0x876   :  { %v2956_v63 = vcombine.high %v2954_v1, %v2954_v1  ;;  %v2963_v0 = vrot.slane %v2954_v1, %v4520_v57 }
 0x878   :  { %v2970_v6 = vrot.slane %v2956_v63, %v4520_v57  ;;  %v2971_v53 = vcombine.high %v2963_v0, %v2963_v0  ;;  %v2977_v60 = vsel %vm1253_vm5, %v2963_v0, -inf }
 0x879   :  { %v2978_v3 = vrot.slane %v2977_v60, 4 }
 0x87a   :  { %v2972_v4 = vcombine.high %v2970_v6, %v2970_v6  ;;  %v2984_v5 = vsel %vm1253_vm5, %v2971_v53, -inf  ;;  %v2991_v7 = vsel %vm1253_vm5, %v2970_v6, -inf }
 0x87b   :  { %v2979_v8 = vmax.f32 %v2977_v60, %v2978_v3  ;;  %v2985_v9 = vrot.slane %v2984_v5, 4  ;;  %v2992_v10 = vrot.slane %v2991_v7, 4 }
 0x87c   :  { %v2998_v11 = vsel %vm1253_vm5, %v2972_v4, -inf }
 0x87d   :  { %v2980_v41 = vrot.slane %v2979_v8, 2  ;;  %v2986_v13 = vmax.f32 %v2984_v5, %v2985_v9  ;;  %v2993_v14 = vmax.f32 %v2991_v7, %v2992_v10  ;;  %v2999_v15 = vrot.slane %v2998_v11, 4 }
 0x87f   :  { %v2981_v16 = vmax.f32 %v2979_v8, %v2980_v41  ;;  %v2987_v57 = vrot.slane %v2986_v13, 2  ;;  %v2994_v17 = vrot.slane %v2993_v14, 2  ;;  %v3000_v18 = vmax.f32 %v2998_v11, %v2999_v15 }
 0x881   :  { %v2982_v19 = vrot.slane %v2981_v16, 1  ;;  %v2988_v20 = vmax.f32 %v2986_v13, %v2987_v57  ;;  %v2995_v21 = vmax.f32 %v2993_v14, %v2994_v17  ;;  %v3001_v40 = vrot.slane %v3000_v18, 2 }
 0x883   :  { %v2989_v44 = vrot.slane %v2988_v20, 1  ;;  %v2996_v43 = vrot.slane %v2995_v21, 1  ;;  %v3002_v49 = vmax.f32 %v3000_v18, %v3001_v40  ;;  %v2983_v23 = vmax.f32 %v2981_v16, %v2982_v19 }
 0x885   :  { %v2990_v24 = vmax.f32 %v2988_v20, %v2989_v44  ;;  %v2997_v26 = vmax.f32 %v2995_v21, %v2996_v43  ;;  %v3003_v27 = vrot.slane %v3002_v49, 1 }
 0x887   :  { %v3004_v28 = vmax.f32 %v3002_v49, %v3003_v27  ;;  %v3018_v48 = vsel %vm1411_vm6, %v2990_v24, %v2983_v23 }
 0x888   :  { %v3019_v52 = vsel %vm1413_vm7, %v2997_v26, %v3018_v48 }
 0x889   :  { %v3020_v29 = vsel %vm1415_vm8, %v3004_v28, %v3019_v52 }
 0x88a   :  { %3871 = vmatprep.subr.msk.mxu1 %vm493_vm4, %v3020_v29 }
 0x88b   :  { %3872 = vmatpush3.xpose.msk.msra.mxu1 %vm493_vm4, %v3020_v29 }
 0x88e   :  { %3874 = vmatmul.mubr.msk.f32.vlgmr.msra.gmra.mrb[12].mxu1 %vm493_vm4, %v3192_v30 }
 0x961   :  { %v3875_v2 = vpop.f32.mrb[12].mxu1 }
 0x962   :  { %3105 = vst.msk [vmem:[%s4740_s7 + $0x8] sm:$0xff] %vm121_vm1, %v3875_v2  ;;  %v3095_v31 = vpop.f32.mrb[13].mxu1 }
 0x963   :  { %3104 = vst.msk [vmem:[%s4740_s7] sm:$0xff] %vm121_vm1, %v3095_v31 }
 0x964   :  { %3110 = vsyncpa [#allocation3], 1 }

</bundles_post_ra>
